<compile_context>
chip_gen: v6e
topology: v6e:2x2x1
jax: 0.10.0
libtpu: 0.0.40
codegen_flags: <defaults>
</compile_context>

<pallas_src>
import functools

import jax
import jax.numpy as jnp
from jax.experimental import pallas as pl
from jax.experimental.pallas import tpu as pltpu

# ----------------------------- config (small synthetic shapes) -----------------------------
BATCH = 2
SEQ = 8
HIDDEN = 32
NUM_HEADS = 2
HEAD_DIM = HIDDEN // NUM_HEADS
FFN = 64
VOCAB = 64
VOCAB_PAD = -(-VOCAB // 128) * 128          # lane-dense vocab slab (multiple of 128)
LAYERS = 2
LN_EPS = 1e-6


# ----------------------------- small helpers -----------------------------
def _layer_norm(x, gamma, beta, eps=LN_EPS):
    # UER-py LayerNorm: gamma * (x - mean) / (std + eps) + beta, std unbiased (torch default).
    n = x.shape[-1]
    mean = jnp.mean(x, axis=-1, keepdims=True)
    var = jnp.mean((x - mean) ** 2, axis=-1, keepdims=True) * (n / (n - 1))
    inv = pl.reciprocal(jnp.sqrt(var) + eps, approx=True)   # EUP reciprocal
    return gamma * (x - mean) * inv + beta


def _gelu(x):
    # TODO(synk): UER-py uses exact erf GELU; tanh approximation used here (erf lowering on
    # Mosaic is not guaranteed). On v5e, if EUP saturates at real FFN widths, swap for a cheaper
    # polynomial/sigmoid approximation.
    c = 0.7978845608028654  # sqrt(2/pi)
    return 0.5 * x * (1.0 + jnp.tanh(c * (x + 0.044715 * x * x * x)))


# ----------------------------- fused forward kernel -----------------------------
def fused_forward_kernel(we_ref, se_ref, pe_ref, emb_ln_ref, mask_ref,
                         wqkv_ref, bqkv_ref, wo_ref, lvec_ref,
                         wff1_ref, bff1_ref, wff2_ref,
                         mlm_w1_ref, mlm_vec_ref, mlm_w2_ref, mlm_b2_ref,
                         tgt_ref,
                         logp_ref, loss_ref,
                         x_scr, *, num_heads):
    """Grid = (row_block r [parallel over batch], layer l [arbitrary]).

    Weight refs arrive pre-sliced to layer l by their BlockSpec index_map; activations for this
    row block are carried in x_scr across the layer axis.
    """
    l = pl.program_id(1)
    S, H = we_ref.shape
    dh = H // num_heads
    scale = 1.0 / (dh ** 0.5)

    # ---- embedding: word + segment + position, then LayerNorm (first layer step only) ----
    @pl.when(l == 0)
    def _():
        e = we_ref[...] + se_ref[...] + pe_ref[...]                         # [S, H]
        x_scr[...] = _layer_norm(e, emb_ln_ref[0:1, :], emb_ln_ref[1:2, :])

    # ---- one encoder layer (weights for layer `l` streamed by BlockSpec) ----
    vec = lvec_ref[...]                                      # [6,H]: bo, g1, b1, b_ff2, g2, b2
    bo, g1, be1 = vec[0:1, :], vec[1:2, :], vec[2:3, :]
    bff2, g2, be2 = vec[3:4, :], vec[4:5, :], vec[5:6, :]

    x = x_scr[...]                                           # [S, H] f32
    qkv = jnp.dot(x.astype(jnp.bfloat16), wqkv_ref[...],
                  preferred_element_type=jnp.float32) + bqkv_ref[...]        # [S, 3H]
    q = qkv[:, 0:H].reshape(S, num_heads, dh).astype(jnp.bfloat16)
    k = qkv[:, H:2 * H].reshape(S, num_heads, dh).astype(jnp.bfloat16)
    v = qkv[:, 2 * H:3 * H].reshape(S, num_heads, dh).astype(jnp.bfloat16)

    mask_b = mask_ref[...][None, :, :]                       # [1,1,S] -> broadcasts over (h, q)
    # batched-heads attention: one contraction over all heads, bf16 operands, f32 accumulate
    scores = jnp.einsum('qhd,khd->hqk', q, k,
                        preferred_element_type=jnp.float32) * scale + mask_b  # [nh, S, S]
    scores = scores - jnp.max(scores, axis=-1, keepdims=True)
    probs = jnp.exp(scores)
    probs = probs * pl.reciprocal(jnp.sum(probs, axis=-1, keepdims=True), approx=True)
    ctx = jnp.einsum('hqk,khd->qhd', probs.astype(jnp.bfloat16), v,
                     preferred_element_type=jnp.float32).reshape(S, H)        # [S, H]

    att = jnp.dot(ctx.astype(jnp.bfloat16), wo_ref[...],
                  preferred_element_type=jnp.float32) + bo
    inter = _layer_norm(x + att, g1, be1)
    h1 = _gelu(jnp.dot(inter.astype(jnp.bfloat16), wff1_ref[...],
                       preferred_element_type=jnp.float32) + bff1_ref[...])
    h2 = jnp.dot(h1.astype(jnp.bfloat16), wff2_ref[...],
                 preferred_element_type=jnp.float32) + bff2
    x_scr[...] = _layer_norm(inter + h2, g2, be2)

    # ---- MLM head: linear -> gelu -> LN -> vocab projection -> log_softmax -> masked NLL ----
    @pl.when(l == pl.num_programs(1) - 1)
    def _():
        mvec = mlm_vec_ref[...]                              # [3,H]: b1, ln_g, ln_b
        hm = jnp.dot(x_scr[...].astype(jnp.bfloat16), mlm_w1_ref[...],
                     preferred_element_type=jnp.float32) + mvec[0:1, :]
        hm = _layer_norm(_gelu(hm), mvec[1:2, :], mvec[2:3, :])
        # lane-dense (padded to 128) vocab projection; padded columns carry a -1e30 bias so they
        # contribute exactly 0 to the softmax denominator.
        logits = jnp.dot(hm.astype(jnp.bfloat16), mlm_w2_ref[...],
                         preferred_element_type=jnp.float32) + mlm_b2_ref[...]   # [S, Vpad]

        m = jnp.max(logits, axis=-1, keepdims=True)
        z = logits - m
        logp = z - jnp.log(jnp.sum(jnp.exp(z), axis=-1, keepdims=True))
        logp_ref[...] = logp                                 # lane-dense store

        # masked NLL partial sums for this row block (tgt > 0); the row axis is parallel across
        # TensorCores, so the final cross-block reduction is done in the wrapper.
        tgt = tgt_ref[...]                                   # [S,1] int32
        vocab_ids = jax.lax.broadcasted_iota(jnp.int32, logp.shape, 1)
        onehot = (vocab_ids == tgt).astype(jnp.float32)
        nll = -jnp.sum(logp * onehot, axis=-1, keepdims=True)                # [S,1]
        maskf = (tgt > 0).astype(jnp.float32)
        num = jnp.sum(nll * maskf)
        den = jnp.sum(maskf)

        lane = jax.lax.broadcasted_iota(jnp.int32, (8, 128), 1)
        sub = jax.lax.broadcasted_iota(jnp.int32, (8, 128), 0)
        first = (sub == 0)
        loss_ref[...] = (jnp.where(first & (lane == 0), num, 0.0)
                         + jnp.where(first & (lane == 1), den, 0.0))


# ----------------------------- parameters -----------------------------
def init_params(key):
    keys = list(jax.random.split(key, 3 + 6 * LAYERS + 2))
    ki = iter(keys)

    def nrm(shape, scale=0.02):
        return (scale * jax.random.normal(next(ki), shape)).astype(jnp.float32)

    p = {
        'word_emb': nrm((VOCAB, HIDDEN)),
        'pos_emb': nrm((SEQ, HIDDEN)),
        'seg_emb': nrm((3, HIDDEN)),
        'emb_ln': jnp.concatenate([jnp.ones((1, HIDDEN), jnp.float32),
                                   jnp.zeros((1, HIDDEN), jnp.float32)], axis=0),  # [2,H] g;b
    }

    w_qkv, b_qkv, w_o, lvec, w_ff1, b_ff1, w_ff2 = [], [], [], [], [], [], []
    for _ in range(LAYERS):
        wq, wk, wv = nrm((HIDDEN, HIDDEN)), nrm((HIDDEN, HIDDEN)), nrm((HIDDEN, HIDDEN))
        w_qkv.append(jnp.concatenate([wq, wk, wv], axis=1))                    # [H, 3H]
        b_qkv.append(jnp.zeros((1, 3 * HIDDEN), jnp.float32))
        w_o.append(nrm((HIDDEN, HIDDEN)))
        # packed per-layer vectors: bo, ln1_g, ln1_b, b_ff2, ln2_g, ln2_b
        lvec.append(jnp.concatenate([jnp.zeros((1, HIDDEN), jnp.float32),
                                     jnp.ones((1, HIDDEN), jnp.float32),
                                     jnp.zeros((1, HIDDEN), jnp.float32),
                                     jnp.zeros((1, HIDDEN), jnp.float32),
                                     jnp.ones((1, HIDDEN), jnp.float32),
                                     jnp.zeros((1, HIDDEN), jnp.float32)], axis=0))  # [6,H]
        w_ff1.append(nrm((HIDDEN, FFN)))
        b_ff1.append(jnp.zeros((1, FFN), jnp.float32))
        w_ff2.append(nrm((FFN, HIDDEN)))

    p['w_qkv'] = jnp.stack(w_qkv).astype(jnp.bfloat16)    # matmul weights streamed as bf16
    p['b_qkv'] = jnp.stack(b_qkv)
    p['w_o'] = jnp.stack(w_o).astype(jnp.bfloat16)
    p['lvec'] = jnp.stack(lvec)
    p['w_ff1'] = jnp.stack(w_ff1).astype(jnp.bfloat16)
    p['b_ff1'] = jnp.stack(b_ff1)
    p['w_ff2'] = jnp.stack(w_ff2).astype(jnp.bfloat16)

    p['mlm_w1'] = nrm((HIDDEN, HIDDEN)).astype(jnp.bfloat16)
    p['mlm_vec'] = jnp.concatenate([jnp.zeros((1, HIDDEN), jnp.float32),
                                    jnp.ones((1, HIDDEN), jnp.float32),
                                    jnp.zeros((1, HIDDEN), jnp.float32)], axis=0)    # b1, g, b
    w2 = nrm((HIDDEN, VOCAB))
    pad = VOCAB_PAD - VOCAB
    p['mlm_w2'] = jnp.pad(w2, ((0, 0), (0, pad))).astype(jnp.bfloat16)               # [H, Vpad]
    p['mlm_b2'] = jnp.concatenate([jnp.zeros((1, VOCAB), jnp.float32),
                                   jnp.full((1, pad), -1e30, jnp.float32)], axis=1)  # [1, Vpad]
    return p


# ----------------------------- full forward (Classifier.forward) -----------------------------
@jax.jit
def classifier_forward(params, src, tgt, seg):
    B, S = src.shape
    H = HIDDEN

    # Embedding-table gathers stay wrapper-side glue at toy vocab size.
    # TODO(synk): at real vocab sizes gather word embeddings inside Pallas via
    # PrefetchScalarGridSpec + pl.Element row-gather instead of fancy indexing here.
    word_e = params['word_emb'][src]                         # [B,S,H]
    seg_e = params['seg_emb'][seg]                           # [B,S,H]
    pos_e = params['pos_emb'][:S]                            # [S,H], broadcast over batch blocks

    mask = ((1.0 - (seg > 0).astype(jnp.float32)) * -10000.0)[:, None, :]   # [B,1,S] additive
    tgt_flat = tgt.reshape(B * S, 1).astype(jnp.int32)

    args = (word_e, seg_e, pos_e, params['emb_ln'], mask,
            params['w_qkv'], params['b_qkv'], params['w_o'], params['lvec'],
            params['w_ff1'], params['b_ff1'], params['w_ff2'],
            params['mlm_w1'], params['mlm_vec'], params['mlm_w2'], params['mlm_b2'],
            tgt_flat)

    in_specs = [
        pl.BlockSpec((None, S, H), lambda r, l: (r, 0, 0)),       # word_e  (per row block)
        pl.BlockSpec((None, S, H), lambda r, l: (r, 0, 0)),       # seg_e
        pl.BlockSpec((S, H), lambda r, l: (0, 0)),                # pos_e   (resident)
        pl.BlockSpec((2, H), lambda r, l: (0, 0)),                # emb_ln
        pl.BlockSpec((None, 1, S), lambda r, l: (r, 0, 0)),       # mask    (per row block)
        pl.BlockSpec((None, H, 3 * H), lambda r, l: (l, 0, 0)),   # w_qkv   (layer-streamed)
        pl.BlockSpec((None, 1, 3 * H), lambda r, l: (l, 0, 0)),   # b_qkv
        pl.BlockSpec((None, H, H), lambda r, l: (l, 0, 0)),       # w_o
        pl.BlockSpec((None, 6, H), lambda r, l: (l, 0, 0)),       # lvec
        pl.BlockSpec((None, H, FFN), lambda r, l: (l, 0, 0)),     # w_ff1
        pl.BlockSpec((None, 1, FFN), lambda r, l: (l, 0, 0)),     # b_ff1
        pl.BlockSpec((None, FFN, H), lambda r, l: (l, 0, 0)),     # w_ff2
        pl.BlockSpec((H, H), lambda r, l: (0, 0)),                # mlm_w1  (resident)
        pl.BlockSpec((3, H), lambda r, l: (0, 0)),                # mlm_vec
        pl.BlockSpec((H, VOCAB_PAD), lambda r, l: (0, 0)),        # mlm_w2
        pl.BlockSpec((1, VOCAB_PAD), lambda r, l: (0, 0)),        # mlm_b2
        pl.BlockSpec((S, 1), lambda r, l: (r, 0)),                # tgt     (per row block)
    ]
    out_specs = (
        pl.BlockSpec((S, VOCAB_PAD), lambda r, l: (r, 0)),        # log-probs (lane-dense)
        pl.BlockSpec((None, 8, 128), lambda r, l: (r, 0, 0)),     # per-block loss partial sums
    )

    logp_pad, loss_parts = pl.pallas_call(
        functools.partial(fused_forward_kernel, num_heads=NUM_HEADS),
        out_shape=(jax.ShapeDtypeStruct((B * S, VOCAB_PAD), jnp.float32),
                   jax.ShapeDtypeStruct((B, 8, 128), jnp.float32)),
        grid=(B, LAYERS),
        in_specs=in_specs,
        out_specs=out_specs,
        scratch_shapes=[pltpu.VMEM((S, H), jnp.float32)],         # activation carry across layers
        compiler_params=pltpu.CompilerParams(
            dimension_semantics=("parallel", "arbitrary")),       # row blocks across TCs (v7x)
    )(*args)

    # TODO(synk): PyTorch mlm2 dynamically filters rows where tgt > 0; with static shapes we
    # return full [B*S, vocab] log-probs and the loss is a masked mean over tgt > 0.
    output_mlm = logp_pad[:, :VOCAB]
    num = jnp.sum(loss_parts[:, 0, 0])
    den = jnp.sum(loss_parts[:, 0, 1])
    loss = num / (den + 1e-6)
    tgt_mlm = tgt.reshape(-1)
    return loss, output_mlm, tgt_mlm


# ----------------------------- main -----------------------------
if __name__ == "__main__":
    key = jax.random.PRNGKey(0)
    kp, ks = jax.random.split(key)
    params = init_params(kp)

    src = jax.random.randint(ks, (BATCH, SEQ), 1, VOCAB, dtype=jnp.int32)
    seg = jnp.ones((BATCH, SEQ), jnp.int32).at[1, 6:].set(0)           # last tokens of batch-1 padded
    tgt = jnp.zeros((BATCH, SEQ), jnp.int32)
    tgt = tgt.at[0, 2].set(5).at[0, 5].set(10).at[1, 1].set(20)        # masked-LM targets (>0)

    loss_mlm, output_mlm, tgt_mlm = classifier_forward(params, src, tgt, seg)
    jax.block_until_ready((loss_mlm, output_mlm, tgt_mlm))

    assert output_mlm.shape == (BATCH * SEQ, VOCAB)
    assert tgt_mlm.shape == (BATCH * SEQ,)
    assert jnp.isfinite(loss_mlm)
    print("KERNEL_OK")
</pallas_src>

<mosaic_0001>
module attributes {stable_mosaic.version = 11 : i64} {
  func.func @fused_forward_kernel(%arg0: i32, %arg1: i32, %arg2: memref<1x8x32xf32, #tpu.memory_space<vmem>>, %arg3: memref<1x8x32xf32, #tpu.memory_space<vmem>>, %arg4: memref<8x32xf32, #tpu.memory_space<vmem>>, %arg5: memref<2x32xf32, #tpu.memory_space<vmem>>, %arg6: memref<1x1x8xf32, #tpu.memory_space<vmem>>, %arg7: memref<1x32x96xbf16, #tpu.memory_space<vmem>>, %arg8: memref<1x1x96xf32, #tpu.memory_space<vmem>>, %arg9: memref<1x32x32xbf16, #tpu.memory_space<vmem>>, %arg10: memref<1x6x32xf32, #tpu.memory_space<vmem>>, %arg11: memref<1x32x64xbf16, #tpu.memory_space<vmem>>, %arg12: memref<1x1x64xf32, #tpu.memory_space<vmem>>, %arg13: memref<1x64x32xbf16, #tpu.memory_space<vmem>>, %arg14: memref<32x32xbf16, #tpu.memory_space<vmem>>, %arg15: memref<3x32xf32, #tpu.memory_space<vmem>>, %arg16: memref<32x128xbf16, #tpu.memory_space<vmem>>, %arg17: memref<1x128xf32, #tpu.memory_space<vmem>>, %arg18: memref<8x1xi32, #tpu.memory_space<vmem>>, %arg19: memref<8x128xf32, #tpu.memory_space<vmem>>, %arg20: memref<1x8x128xf32, #tpu.memory_space<vmem>>, %arg21: memref<8x32xf32, #tpu.memory_space<vmem>>) attributes {dimension_semantics = [#tpu.dimension_semantics<parallel>, #tpu.dimension_semantics<arbitrary>], iteration_bounds = array<i64: 2, 2>, scalar_prefetch = 0 : i64, scratch_operands = 1 : i64, tpu.core_type = #tpu.core_type<tc>, window_params = [{transform_indices = @transform_0, window_bounds = array<i64: 1, 8, 32>}, {transform_indices = @transform_1, window_bounds = array<i64: 1, 8, 32>}, {pipeline_mode = #tpu.pipeline_mode<synchronous>, transform_indices = @transform_2, window_bounds = array<i64: 8, 32>}, {pipeline_mode = #tpu.pipeline_mode<synchronous>, transform_indices = @transform_3, window_bounds = array<i64: 2, 32>}, {transform_indices = @transform_4, window_bounds = array<i64: 1, 1, 8>}, {transform_indices = @transform_5, window_bounds = array<i64: 1, 32, 96>}, {transform_indices = @transform_6, window_bounds = array<i64: 1, 1, 96>}, {transform_indices = @transform_7, window_bounds = array<i64: 1, 32, 32>}, {transform_indices = @transform_8, window_bounds = array<i64: 1, 6, 32>}, {transform_indices = @transform_9, window_bounds = array<i64: 1, 32, 64>}, {transform_indices = @transform_10, window_bounds = array<i64: 1, 1, 64>}, {transform_indices = @transform_11, window_bounds = array<i64: 1, 64, 32>}, {pipeline_mode = #tpu.pipeline_mode<synchronous>, transform_indices = @transform_12, window_bounds = array<i64: 32, 32>}, {pipeline_mode = #tpu.pipeline_mode<synchronous>, transform_indices = @transform_13, window_bounds = array<i64: 3, 32>}, {pipeline_mode = #tpu.pipeline_mode<synchronous>, transform_indices = @transform_14, window_bounds = array<i64: 32, 128>}, {pipeline_mode = #tpu.pipeline_mode<synchronous>, transform_indices = @transform_15, window_bounds = array<i64: 1, 128>}, {transform_indices = @transform_16, window_bounds = array<i64: 8, 1>}, {transform_indices = @transform_17, window_bounds = array<i64: 8, 128>}, {transform_indices = @transform_18, window_bounds = array<i64: 1, 8, 128>}]} {
    %c0_i32 = arith.constant 0 : i32
    %0 = arith.cmpi eq, %arg1, %c0_i32 : i32
    %1 = arith.extui %0 : i1 to i32
    %c0_i32_0 = arith.constant 0 : i32
    %2 = arith.cmpi ne, %1, %c0_i32_0 : i32
    scf.if %2 {
      %c0_53 = arith.constant 0 : index
      %c0_54 = arith.constant 0 : index
      %c0_55 = arith.constant 0 : index
      %140 = vector.load %arg2[%c0_53, %c0_54, %c0_55] : memref<1x8x32xf32, #tpu.memory_space<vmem>>, vector<1x8x32xf32>
      %141 = vector.shape_cast %140 : vector<1x8x32xf32> to vector<8x32xf32>
      %c0_56 = arith.constant 0 : index
      %c0_57 = arith.constant 0 : index
      %c0_58 = arith.constant 0 : index
      %142 = vector.load %arg3[%c0_56, %c0_57, %c0_58] : memref<1x8x32xf32, #tpu.memory_space<vmem>>, vector<1x8x32xf32>
      %143 = vector.shape_cast %142 : vector<1x8x32xf32> to vector<8x32xf32>
      %144 = arith.addf %141, %143 : vector<8x32xf32>
      %c0_59 = arith.constant 0 : index
      %c0_60 = arith.constant 0 : index
      %145 = vector.load %arg4[%c0_59, %c0_60] : memref<8x32xf32, #tpu.memory_space<vmem>>, vector<8x32xf32>
      %146 = arith.addf %144, %145 : vector<8x32xf32>
      %c0_61 = arith.constant 0 : index
      %c0_62 = arith.constant 0 : index
      %147 = vector.load %arg5[%c0_61, %c0_62] : memref<2x32xf32, #tpu.memory_space<vmem>>, vector<1x32xf32>
      %c1 = arith.constant 1 : index
      %c0_63 = arith.constant 0 : index
      %148 = vector.load %arg5[%c1, %c0_63] : memref<2x32xf32, #tpu.memory_space<vmem>>, vector<1x32xf32>
      %cst_64 = arith.constant dense<0.000000e+00> : vector<8xf32>
      %149 = vector.multi_reduction <add>, %146, %cst_64 [1] : vector<8x32xf32> to vector<8xf32>
      %150 = vector.shape_cast %149 : vector<8xf32> to vector<8x1xf32>
      %cst_65 = arith.constant 3.200000e+01 : f32
      %151 = vector.broadcast %cst_65 : f32 to vector<8x1xf32>
      %152 = arith.divf %150, %151 : vector<8x1xf32>
      %153 = vector.broadcast %152 : vector<8x1xf32> to vector<8x32xf32>
      %154 = arith.subf %146, %153 : vector<8x32xf32>
      %155 = arith.mulf %154, %154 : vector<8x32xf32>
      %cst_66 = arith.constant dense<0.000000e+00> : vector<8xf32>
      %156 = vector.multi_reduction <add>, %155, %cst_66 [1] : vector<8x32xf32> to vector<8xf32>
      %157 = vector.shape_cast %156 : vector<8xf32> to vector<8x1xf32>
      %cst_67 = arith.constant 3.200000e+01 : f32
      %158 = vector.broadcast %cst_67 : f32 to vector<8x1xf32>
      %159 = arith.divf %157, %158 : vector<8x1xf32>
      %cst_68 = arith.constant 1.03225803 : f32
      %160 = vector.broadcast %cst_68 : f32 to vector<8x1xf32>
      %161 = arith.mulf %159, %160 : vector<8x1xf32>
      %162 = math.sqrt %161 : vector<8x1xf32>
      %cst_69 = arith.constant 9.99999997E-7 : f32
      %163 = vector.broadcast %cst_69 : f32 to vector<8x1xf32>
      %164 = arith.addf %162, %163 : vector<8x1xf32>
      %165 = tpu.reciprocal %164 {approx = true} : vector<8x1xf32> -> vector<8x1xf32>
      %166 = vector.broadcast %152 : vector<8x1xf32> to vector<8x32xf32>
      %167 = arith.subf %146, %166 : vector<8x32xf32>
      %168 = vector.broadcast %147 : vector<1x32xf32> to vector<8x32xf32>
      %169 = arith.mulf %168, %167 : vector<8x32xf32>
      %170 = vector.broadcast %165 : vector<8x1xf32> to vector<8x32xf32>
      %171 = arith.mulf %169, %170 : vector<8x32xf32>
      %172 = vector.broadcast %148 : vector<1x32xf32> to vector<8x32xf32>
      %173 = arith.addf %171, %172 : vector<8x32xf32>
      %c0_70 = arith.constant 0 : index
      %c0_71 = arith.constant 0 : index
      %174 = vector.load %arg21[%c0_70, %c0_71] : memref<8x32xf32, #tpu.memory_space<vmem>>, vector<8x32xf32>
      tpu.vector_store %arg21[%c0_70, %c0_71], %173 {strides = array<i32>} : memref<8x32xf32, #tpu.memory_space<vmem>>, vector<8x32xf32>,
    } else {
    }
    %c0 = arith.constant 0 : index
    %c0_1 = arith.constant 0 : index
    %c0_2 = arith.constant 0 : index
    %3 = vector.load %arg10[%c0, %c0_1, %c0_2] : memref<1x6x32xf32, #tpu.memory_space<vmem>>, vector<1x6x32xf32>
    %4 = vector.shape_cast %3 : vector<1x6x32xf32> to vector<6x32xf32>
    %5 = vector.extract_strided_slice %4 {offsets = [0, 0], sizes = [1, 32], strides = [1, 1]} : vector<6x32xf32> to vector<1x32xf32>
    %6 = vector.extract_strided_slice %4 {offsets = [1, 0], sizes = [1, 32], strides = [1, 1]} : vector<6x32xf32> to vector<1x32xf32>
    %7 = vector.extract_strided_slice %4 {offsets = [2, 0], sizes = [1, 32], strides = [1, 1]} : vector<6x32xf32> to vector<1x32xf32>
    %8 = vector.extract_strided_slice %4 {offsets = [3, 0], sizes = [1, 32], strides = [1, 1]} : vector<6x32xf32> to vector<1x32xf32>
    %9 = vector.extract_strided_slice %4 {offsets = [4, 0], sizes = [1, 32], strides = [1, 1]} : vector<6x32xf32> to vector<1x32xf32>
    %10 = vector.extract_strided_slice %4 {offsets = [5, 0], sizes = [1, 32], strides = [1, 1]} : vector<6x32xf32> to vector<1x32xf32>
    %c0_3 = arith.constant 0 : index
    %c0_4 = arith.constant 0 : index
    %11 = vector.load %arg21[%c0_3, %c0_4] : memref<8x32xf32, #tpu.memory_space<vmem>>, vector<8x32xf32>
    %12 = arith.truncf %11 : vector<8x32xf32> to vector<8x32xbf16>
    %c0_5 = arith.constant 0 : index
    %c0_6 = arith.constant 0 : index
    %c0_7 = arith.constant 0 : index
    %13 = vector.load %arg7[%c0_5, %c0_6, %c0_7] : memref<1x32x96xbf16, #tpu.memory_space<vmem>>, vector<1x32x96xbf16>
    %14 = vector.shape_cast %13 : vector<1x32x96xbf16> to vector<32x96xbf16>
    %cst = arith.constant dense<0.000000e+00> : vector<8x96xf32>
    %15 = tpu.matmul %12, %14, %cst {dimension_numbers = #tpu.dot_dimension_numbers<[1], [0], [0], [1], [0, 0, 1, 1], [], []>} : vector<8x32xbf16>, vector<32x96xbf16>, vector<8x96xf32> -> vector<8x96xf32>
    %c0_8 = arith.constant 0 : index
    %c0_9 = arith.constant 0 : index
    %c0_10 = arith.constant 0 : index
    %16 = vector.load %arg8[%c0_8, %c0_9, %c0_10] : memref<1x1x96xf32, #tpu.memory_space<vmem>>, vector<1x1x96xf32>
    %17 = vector.shape_cast %16 : vector<1x1x96xf32> to vector<1x96xf32>
    %18 = vector.broadcast %17 : vector<1x96xf32> to vector<8x96xf32>
    %19 = arith.addf %15, %18 : vector<8x96xf32>
    %20 = vector.extract_strided_slice %19 {offsets = [0, 0], sizes = [8, 32], strides = [1, 1]} : vector<8x96xf32> to vector<8x32xf32>
    %21 = vector.shape_cast %20 : vector<8x32xf32> to vector<8x2x16xf32>
    %22 = arith.truncf %21 : vector<8x2x16xf32> to vector<8x2x16xbf16>
    %23 = vector.extract_strided_slice %19 {offsets = [0, 32], sizes = [8, 32], strides = [1, 1]} : vector<8x96xf32> to vector<8x32xf32>
    %24 = vector.shape_cast %23 : vector<8x32xf32> to vector<8x2x16xf32>
    %25 = arith.truncf %24 : vector<8x2x16xf32> to vector<8x2x16xbf16>
    %26 = vector.extract_strided_slice %19 {offsets = [0, 64], sizes = [8, 32], strides = [1, 1]} : vector<8x96xf32> to vector<8x32xf32>
    %27 = vector.shape_cast %26 : vector<8x32xf32> to vector<8x2x16xf32>
    %28 = arith.truncf %27 : vector<8x2x16xf32> to vector<8x2x16xbf16>
    %c0_11 = arith.constant 0 : index
    %c0_12 = arith.constant 0 : index
    %c0_13 = arith.constant 0 : index
    %29 = vector.load %arg6[%c0_11, %c0_12, %c0_13] : memref<1x1x8xf32, #tpu.memory_space<vmem>>, vector<1x1x8xf32>
    %30 = vector.shape_cast %29 : vector<1x1x8xf32> to vector<1x8xf32>
    %31 = vector.shape_cast %30 : vector<1x8xf32> to vector<1x1x8xf32>
    "tpu.trace_start"() <{level = 10 : i32, message = "qhd,khd->hqk"}> : () -> ()
    %cst_14 = arith.constant dense<0.000000e+00> : vector<2x8x8xf32>
    %32 = tpu.matmul %22, %25, %cst_14 {dimension_numbers = #tpu.dot_dimension_numbers<[2], [2], [0], [0], [0, 1, 0, 0, 1, 0], [1], [1]>} : vector<8x2x16xbf16>, vector<8x2x16xbf16>, vector<2x8x8xf32> -> vector<2x8x8xf32>
    "tpu.trace_stop"() : () -> ()
    %cst_15 = arith.constant 2.500000e-01 : f32
    %33 = vector.broadcast %cst_15 : f32 to vector<2x8x8xf32>
    %34 = arith.mulf %32, %33 : vector<2x8x8xf32>
    %35 = vector.broadcast %31 : vector<1x1x8xf32> to vector<2x8x8xf32>
    %36 = arith.addf %34, %35 : vector<2x8x8xf32>
    %cst_16 = arith.constant dense<0xFF800000> : vector<2x8xf32>
    %37 = vector.multi_reduction <maximumf>, %36, %cst_16 [2] : vector<2x8x8xf32> to vector<2x8xf32>
    %38 = vector.shape_cast %37 : vector<2x8xf32> to vector<2x8x1xf32>
    %39 = vector.broadcast %38 : vector<2x8x1xf32> to vector<2x8x8xf32>
    %40 = arith.subf %36, %39 : vector<2x8x8xf32>
    %41 = math.exp %40 : vector<2x8x8xf32>
    %cst_17 = arith.constant dense<0.000000e+00> : vector<2x8xf32>
    %42 = vector.multi_reduction <add>, %41, %cst_17 [2] : vector<2x8x8xf32> to vector<2x8xf32>
    %43 = vector.shape_cast %42 : vector<2x8xf32> to vector<2x8x1xf32>
    %44 = tpu.reciprocal %43 {approx = true} : vector<2x8x1xf32> -> vector<2x8x1xf32>
    %45 = vector.broadcast %44 : vector<2x8x1xf32> to vector<2x8x8xf32>
    %46 = arith.mulf %41, %45 : vector<2x8x8xf32>
    %47 = arith.truncf %46 : vector<2x8x8xf32> to vector<2x8x8xbf16>
    "tpu.trace_start"() <{level = 10 : i32, message = "hqk,khd->qhd"}> : () -> ()
    %cst_18 = arith.constant dense<0.000000e+00> : vector<2x16x8xf32>
    %48 = tpu.matmul %28, %47, %cst_18 {dimension_numbers = #tpu.dot_dimension_numbers<[0], [2], [2], [1], [0, 1, 0, 2, 1, 1], [1], [0]>} : vector<8x2x16xbf16>, vector<2x8x8xbf16>, vector<2x16x8xf32> -> vector<2x16x8xf32>
    %49 = tpu.transpose %48, [2, 0, 1] : vector<2x16x8xf32> -> vector<8x2x16xf32>
    "tpu.trace_stop"() : () -> ()
    %50 = vector.shape_cast %49 : vector<8x2x16xf32> to vector<8x32xf32>
    %51 = arith.truncf %50 : vector<8x32xf32> to vector<8x32xbf16>
    %c0_19 = arith.constant 0 : index
    %c0_20 = arith.constant 0 : index
    %c0_21 = arith.constant 0 : index
    %52 = vector.load %arg9[%c0_19, %c0_20, %c0_21] : memref<1x32x32xbf16, #tpu.memory_space<vmem>>, vector<1x32x32xbf16>
    %53 = vector.shape_cast %52 : vector<1x32x32xbf16> to vector<32x32xbf16>
    %cst_22 = arith.constant dense<0.000000e+00> : vector<8x32xf32>
    %54 = tpu.matmul %51, %53, %cst_22 {dimension_numbers = #tpu.dot_dimension_numbers<[1], [0], [0], [1], [0, 0, 1, 1], [], []>} : vector<8x32xbf16>, vector<32x32xbf16>, vector<8x32xf32> -> vector<8x32xf32>
    %55 = vector.broadcast %5 : vector<1x32xf32> to vector<8x32xf32>
    %56 = arith.addf %54, %55 : vector<8x32xf32>
    %57 = arith.addf %11, %56 : vector<8x32xf32>
    %cst_23 = arith.constant dense<0.000000e+00> : vector<8xf32>
    %58 = vector.multi_reduction <add>, %57, %cst_23 [1] : vector<8x32xf32> to vector<8xf32>
    %59 = vector.shape_cast %58 : vector<8xf32> to vector<8x1xf32>
    %cst_24 = arith.constant 3.200000e+01 : f32
    %60 = vector.broadcast %cst_24 : f32 to vector<8x1xf32>
    %61 = arith.divf %59, %60 : vector<8x1xf32>
    %62 = vector.broadcast %61 : vector<8x1xf32> to vector<8x32xf32>
    %63 = arith.subf %57, %62 : vector<8x32xf32>
    %64 = arith.mulf %63, %63 : vector<8x32xf32>
    %cst_25 = arith.constant dense<0.000000e+00> : vector<8xf32>
    %65 = vector.multi_reduction <add>, %64, %cst_25 [1] : vector<8x32xf32> to vector<8xf32>
    %66 = vector.shape_cast %65 : vector<8xf32> to vector<8x1xf32>
    %cst_26 = arith.constant 3.200000e+01 : f32
    %67 = vector.broadcast %cst_26 : f32 to vector<8x1xf32>
    %68 = arith.divf %66, %67 : vector<8x1xf32>
    %cst_27 = arith.constant 1.03225803 : f32
    %69 = vector.broadcast %cst_27 : f32 to vector<8x1xf32>
    %70 = arith.mulf %68, %69 : vector<8x1xf32>
    %71 = math.sqrt %70 : vector<8x1xf32>
    %cst_28 = arith.constant 9.99999997E-7 : f32
    %72 = vector.broadcast %cst_28 : f32 to vector<8x1xf32>
    %73 = arith.addf %71, %72 : vector<8x1xf32>
    %74 = tpu.reciprocal %73 {approx = true} : vector<8x1xf32> -> vector<8x1xf32>
    %75 = vector.broadcast %61 : vector<8x1xf32> to vector<8x32xf32>
    %76 = arith.subf %57, %75 : vector<8x32xf32>
    %77 = vector.broadcast %6 : vector<1x32xf32> to vector<8x32xf32>
    %78 = arith.mulf %77, %76 : vector<8x32xf32>
    %79 = vector.broadcast %74 : vector<8x1xf32> to vector<8x32xf32>
    %80 = arith.mulf %78, %79 : vector<8x32xf32>
    %81 = vector.broadcast %7 : vector<1x32xf32> to vector<8x32xf32>
    %82 = arith.addf %80, %81 : vector<8x32xf32>
    %83 = arith.truncf %82 : vector<8x32xf32> to vector<8x32xbf16>
    %c0_29 = arith.constant 0 : index
    %c0_30 = arith.constant 0 : index
    %c0_31 = arith.constant 0 : index
    %84 = vector.load %arg11[%c0_29, %c0_30, %c0_31] : memref<1x32x64xbf16, #tpu.memory_space<vmem>>, vector<1x32x64xbf16>
    %85 = vector.shape_cast %84 : vector<1x32x64xbf16> to vector<32x64xbf16>
    %cst_32 = arith.constant dense<0.000000e+00> : vector<8x64xf32>
    %86 = tpu.matmul %83, %85, %cst_32 {dimension_numbers = #tpu.dot_dimension_numbers<[1], [0], [0], [1], [0, 0, 1, 1], [], []>} : vector<8x32xbf16>, vector<32x64xbf16>, vector<8x64xf32> -> vector<8x64xf32>
    %c0_33 = arith.constant 0 : index
    %c0_34 = arith.constant 0 : index
    %c0_35 = arith.constant 0 : index
    %87 = vector.load %arg12[%c0_33, %c0_34, %c0_35] : memref<1x1x64xf32, #tpu.memory_space<vmem>>, vector<1x1x64xf32>
    %88 = vector.shape_cast %87 : vector<1x1x64xf32> to vector<1x64xf32>
    %89 = vector.broadcast %88 : vector<1x64xf32> to vector<8x64xf32>
    %90 = arith.addf %86, %89 : vector<8x64xf32>
    %cst_36 = arith.constant 5.000000e-01 : f32
    %91 = vector.broadcast %cst_36 : f32 to vector<8x64xf32>
    %92 = arith.mulf %91, %90 : vector<8x64xf32>
    %cst_37 = arith.constant 4.471500e-02 : f32
    %93 = vector.broadcast %cst_37 : f32 to vector<8x64xf32>
    %94 = arith.mulf %93, %90 : vector<8x64xf32>
    %95 = arith.mulf %94, %90 : vector<8x64xf32>
    %96 = arith.mulf %95, %90 : vector<8x64xf32>
    %97 = arith.addf %90, %96 : vector<8x64xf32>
    %cst_38 = arith.constant 0.797884583 : f32
    %98 = vector.broadcast %cst_38 : f32 to vector<8x64xf32>
    %99 = arith.mulf %98, %97 : vector<8x64xf32>
    %100 = math.tanh %99 : vector<8x64xf32>
    %cst_39 = arith.constant 1.000000e+00 : f32
    %101 = vector.broadcast %cst_39 : f32 to vector<8x64xf32>
    %102 = arith.addf %101, %100 : vector<8x64xf32>
    %103 = arith.mulf %92, %102 : vector<8x64xf32>
    %104 = arith.truncf %103 : vector<8x64xf32> to vector<8x64xbf16>
    %c0_40 = arith.constant 0 : index
    %c0_41 = arith.constant 0 : index
    %c0_42 = arith.constant 0 : index
    %105 = vector.load %arg13[%c0_40, %c0_41, %c0_42] : memref<1x64x32xbf16, #tpu.memory_space<vmem>>, vector<1x64x32xbf16>
    %106 = vector.shape_cast %105 : vector<1x64x32xbf16> to vector<64x32xbf16>
    %cst_43 = arith.constant dense<0.000000e+00> : vector<8x32xf32>
    %107 = tpu.matmul %104, %106, %cst_43 {dimension_numbers = #tpu.dot_dimension_numbers<[1], [0], [0], [1], [0, 0, 1, 1], [], []>} : vector<8x64xbf16>, vector<64x32xbf16>, vector<8x32xf32> -> vector<8x32xf32>
    %108 = vector.broadcast %8 : vector<1x32xf32> to vector<8x32xf32>
    %109 = arith.addf %107, %108 : vector<8x32xf32>
    %110 = arith.addf %82, %109 : vector<8x32xf32>
    %cst_44 = arith.constant dense<0.000000e+00> : vector<8xf32>
    %111 = vector.multi_reduction <add>, %110, %cst_44 [1] : vector<8x32xf32> to vector<8xf32>
    %112 = vector.shape_cast %111 : vector<8xf32> to vector<8x1xf32>
    %cst_45 = arith.constant 3.200000e+01 : f32
    %113 = vector.broadcast %cst_45 : f32 to vector<8x1xf32>
    %114 = arith.divf %112, %113 : vector<8x1xf32>
    %115 = vector.broadcast %114 : vector<8x1xf32> to vector<8x32xf32>
    %116 = arith.subf %110, %115 : vector<8x32xf32>
    %117 = arith.mulf %116, %116 : vector<8x32xf32>
    %cst_46 = arith.constant dense<0.000000e+00> : vector<8xf32>
    %118 = vector.multi_reduction <add>, %117, %cst_46 [1] : vector<8x32xf32> to vector<8xf32>
    %119 = vector.shape_cast %118 : vector<8xf32> to vector<8x1xf32>
    %cst_47 = arith.constant 3.200000e+01 : f32
    %120 = vector.broadcast %cst_47 : f32 to vector<8x1xf32>
    %121 = arith.divf %119, %120 : vector<8x1xf32>
    %cst_48 = arith.constant 1.03225803 : f32
    %122 = vector.broadcast %cst_48 : f32 to vector<8x1xf32>
    %123 = arith.mulf %121, %122 : vector<8x1xf32>
    %124 = math.sqrt %123 : vector<8x1xf32>
    %cst_49 = arith.constant 9.99999997E-7 : f32
    %125 = vector.broadcast %cst_49 : f32 to vector<8x1xf32>
    %126 = arith.addf %124, %125 : vector<8x1xf32>
    %127 = tpu.reciprocal %126 {approx = true} : vector<8x1xf32> -> vector<8x1xf32>
    %128 = vector.broadcast %114 : vector<8x1xf32> to vector<8x32xf32>
    %129 = arith.subf %110, %128 : vector<8x32xf32>
    %130 = vector.broadcast %9 : vector<1x32xf32> to vector<8x32xf32>
    %131 = arith.mulf %130, %129 : vector<8x32xf32>
    %132 = vector.broadcast %127 : vector<8x1xf32> to vector<8x32xf32>
    %133 = arith.mulf %131, %132 : vector<8x32xf32>
    %134 = vector.broadcast %10 : vector<1x32xf32> to vector<8x32xf32>
    %135 = arith.addf %133, %134 : vector<8x32xf32>
    %c0_50 = arith.constant 0 : index
    %c0_51 = arith.constant 0 : index
    %136 = vector.load %arg21[%c0_50, %c0_51] : memref<8x32xf32, #tpu.memory_space<vmem>>, vector<8x32xf32>
    tpu.vector_store %arg21[%c0_50, %c0_51], %135 {strides = array<i32>} : memref<8x32xf32, #tpu.memory_space<vmem>>, vector<8x32xf32>,
    %c1_i32 = arith.constant 1 : i32
    %137 = arith.cmpi eq, %arg1, %c1_i32 : i32
    %138 = arith.extui %137 : i1 to i32
    %c0_i32_52 = arith.constant 0 : i32
    %139 = arith.cmpi ne, %138, %c0_i32_52 : i32
    scf.if %139 {
      %c0_53 = arith.constant 0 : index
      %c0_54 = arith.constant 0 : index
      %140 = vector.load %arg15[%c0_53, %c0_54] : memref<3x32xf32, #tpu.memory_space<vmem>>, vector<3x32xf32>
      %c0_55 = arith.constant 0 : index
      %c0_56 = arith.constant 0 : index
      %141 = vector.load %arg21[%c0_55, %c0_56] : memref<8x32xf32, #tpu.memory_space<vmem>>, vector<8x32xf32>
      %142 = arith.truncf %141 : vector<8x32xf32> to vector<8x32xbf16>
      %c0_57 = arith.constant 0 : index
      %c0_58 = arith.constant 0 : index
      %143 = vector.load %arg14[%c0_57, %c0_58] : memref<32x32xbf16, #tpu.memory_space<vmem>>, vector<32x32xbf16>
      %cst_59 = arith.constant dense<0.000000e+00> : vector<8x32xf32>
      %144 = tpu.matmul %142, %143, %cst_59 {dimension_numbers = #tpu.dot_dimension_numbers<[1], [0], [0], [1], [0, 0, 1, 1], [], []>} : vector<8x32xbf16>, vector<32x32xbf16>, vector<8x32xf32> -> vector<8x32xf32>
      %145 = vector.extract_strided_slice %140 {offsets = [0, 0], sizes = [1, 32], strides = [1, 1]} : vector<3x32xf32> to vector<1x32xf32>
      %146 = vector.broadcast %145 : vector<1x32xf32> to vector<8x32xf32>
      %147 = arith.addf %144, %146 : vector<8x32xf32>
      %cst_60 = arith.constant 5.000000e-01 : f32
      %148 = vector.broadcast %cst_60 : f32 to vector<8x32xf32>
      %149 = arith.mulf %148, %147 : vector<8x32xf32>
      %cst_61 = arith.constant 4.471500e-02 : f32
      %150 = vector.broadcast %cst_61 : f32 to vector<8x32xf32>
      %151 = arith.mulf %150, %147 : vector<8x32xf32>
      %152 = arith.mulf %151, %147 : vector<8x32xf32>
      %153 = arith.mulf %152, %147 : vector<8x32xf32>
      %154 = arith.addf %147, %153 : vector<8x32xf32>
      %cst_62 = arith.constant 0.797884583 : f32
      %155 = vector.broadcast %cst_62 : f32 to vector<8x32xf32>
      %156 = arith.mulf %155, %154 : vector<8x32xf32>
      %157 = math.tanh %156 : vector<8x32xf32>
      %cst_63 = arith.constant 1.000000e+00 : f32
      %158 = vector.broadcast %cst_63 : f32 to vector<8x32xf32>
      %159 = arith.addf %158, %157 : vector<8x32xf32>
      %160 = arith.mulf %149, %159 : vector<8x32xf32>
      %161 = vector.extract_strided_slice %140 {offsets = [1, 0], sizes = [1, 32], strides = [1, 1]} : vector<3x32xf32> to vector<1x32xf32>
      %162 = vector.extract_strided_slice %140 {offsets = [2, 0], sizes = [1, 32], strides = [1, 1]} : vector<3x32xf32> to vector<1x32xf32>
      %cst_64 = arith.constant dense<0.000000e+00> : vector<8xf32>
      %163 = vector.multi_reduction <add>, %160, %cst_64 [1] : vector<8x32xf32> to vector<8xf32>
      %164 = vector.shape_cast %163 : vector<8xf32> to vector<8x1xf32>
      %cst_65 = arith.constant 3.200000e+01 : f32
      %165 = vector.broadcast %cst_65 : f32 to vector<8x1xf32>
      %166 = arith.divf %164, %165 : vector<8x1xf32>
      %167 = vector.broadcast %166 : vector<8x1xf32> to vector<8x32xf32>
      %168 = arith.subf %160, %167 : vector<8x32xf32>
      %169 = arith.mulf %168, %168 : vector<8x32xf32>
      %cst_66 = arith.constant dense<0.000000e+00> : vector<8xf32>
      %170 = vector.multi_reduction <add>, %169, %cst_66 [1] : vector<8x32xf32> to vector<8xf32>
      %171 = vector.shape_cast %170 : vector<8xf32> to vector<8x1xf32>
      %cst_67 = arith.constant 3.200000e+01 : f32
      %172 = vector.broadcast %cst_67 : f32 to vector<8x1xf32>
      %173 = arith.divf %171, %172 : vector<8x1xf32>
      %cst_68 = arith.constant 1.03225803 : f32
      %174 = vector.broadcast %cst_68 : f32 to vector<8x1xf32>
      %175 = arith.mulf %173, %174 : vector<8x1xf32>
      %176 = math.sqrt %175 : vector<8x1xf32>
      %cst_69 = arith.constant 9.99999997E-7 : f32
      %177 = vector.broadcast %cst_69 : f32 to vector<8x1xf32>
      %178 = arith.addf %176, %177 : vector<8x1xf32>
      %179 = tpu.reciprocal %178 {approx = true} : vector<8x1xf32> -> vector<8x1xf32>
      %180 = vector.broadcast %166 : vector<8x1xf32> to vector<8x32xf32>
      %181 = arith.subf %160, %180 : vector<8x32xf32>
      %182 = vector.broadcast %161 : vector<1x32xf32> to vector<8x32xf32>
      %183 = arith.mulf %182, %181 : vector<8x32xf32>
      %184 = vector.broadcast %179 : vector<8x1xf32> to vector<8x32xf32>
      %185 = arith.mulf %183, %184 : vector<8x32xf32>
      %186 = vector.broadcast %162 : vector<1x32xf32> to vector<8x32xf32>
      %187 = arith.addf %185, %186 : vector<8x32xf32>
      %188 = arith.truncf %187 : vector<8x32xf32> to vector<8x32xbf16>
      %c0_70 = arith.constant 0 : index
      %c0_71 = arith.constant 0 : index
      %189 = vector.load %arg16[%c0_70, %c0_71] : memref<32x128xbf16, #tpu.memory_space<vmem>>, vector<32x128xbf16>
      %cst_72 = arith.constant dense<0.000000e+00> : vector<8x128xf32>
      %190 = tpu.matmul %188, %189, %cst_72 {dimension_numbers = #tpu.dot_dimension_numbers<[1], [0], [0], [1], [0, 0, 1, 1], [], []>} : vector<8x32xbf16>, vector<32x128xbf16>, vector<8x128xf32> -> vector<8x128xf32>
      %c0_73 = arith.constant 0 : index
      %c0_74 = arith.constant 0 : index
      %191 = vector.load %arg17[%c0_73, %c0_74] : memref<1x128xf32, #tpu.memory_space<vmem>>, vector<1x128xf32>
      %192 = vector.broadcast %191 : vector<1x128xf32> to vector<8x128xf32>
      %193 = arith.addf %190, %192 : vector<8x128xf32>
      %cst_75 = arith.constant dense<0xFF800000> : vector<8xf32>
      %194 = vector.multi_reduction <maximumf>, %193, %cst_75 [1] : vector<8x128xf32> to vector<8xf32>
      %195 = vector.shape_cast %194 : vector<8xf32> to vector<8x1xf32>
      %196 = vector.broadcast %195 : vector<8x1xf32> to vector<8x128xf32>
      %197 = arith.subf %193, %196 : vector<8x128xf32>
      %198 = math.exp %197 : vector<8x128xf32>
      %cst_76 = arith.constant dense<0.000000e+00> : vector<8xf32>
      %199 = vector.multi_reduction <add>, %198, %cst_76 [1] : vector<8x128xf32> to vector<8xf32>
      %200 = vector.shape_cast %199 : vector<8xf32> to vector<8x1xf32>
      %201 = math.log %200 : vector<8x1xf32>
      %202 = vector.broadcast %201 : vector<8x1xf32> to vector<8x128xf32>
      %203 = arith.subf %197, %202 : vector<8x128xf32>
      %c0_77 = arith.constant 0 : index
      %c0_78 = arith.constant 0 : index
      %204 = vector.load %arg19[%c0_77, %c0_78] : memref<8x128xf32, #tpu.memory_space<vmem>>, vector<8x128xf32>
      tpu.vector_store %arg19[%c0_77, %c0_78], %203 {strides = array<i32>} : memref<8x128xf32, #tpu.memory_space<vmem>>, vector<8x128xf32>,
      %c0_79 = arith.constant 0 : index
      %c0_80 = arith.constant 0 : index
      %205 = vector.load %arg18[%c0_79, %c0_80] : memref<8x1xi32, #tpu.memory_space<vmem>>, vector<8x1xi32>
      %206 = tpu.iota {dimensions = array<i32: 1>} : vector<8x128xi32>
      %207 = vector.broadcast %205 : vector<8x1xi32> to vector<8x128xi32>
      %208 = arith.cmpi eq, %206, %207 : vector<8x128xi32>
      %209 = arith.extui %208 : vector<8x128xi1> to vector<8x128xi32>
      %210 = arith.sitofp %209 : vector<8x128xi32> to vector<8x128xf32>
      %211 = arith.mulf %203, %210 : vector<8x128xf32>
      %cst_81 = arith.constant dense<0.000000e+00> : vector<8xf32>
      %212 = vector.multi_reduction <add>, %211, %cst_81 [1] : vector<8x128xf32> to vector<8xf32>
      %213 = vector.shape_cast %212 : vector<8xf32> to vector<8x1xf32>
      %cst_82 = arith.constant 0.000000e+00 : f32
      %214 = vector.broadcast %cst_82 : f32 to vector<8x1xf32>
      %215 = arith.subf %214, %213 : vector<8x1xf32>
      %c0_i32_83 = arith.constant 0 : i32
      %216 = vector.broadcast %c0_i32_83 : i32 to vector<8x1xi32>
      %217 = arith.cmpi sgt, %205, %216 : vector<8x1xi32>
      %218 = arith.extui %217 : vector<8x1xi1> to vector<8x1xi32>
      %219 = arith.sitofp %218 : vector<8x1xi32> to vector<8x1xf32>
      %220 = arith.mulf %215, %219 : vector<8x1xf32>
      %221 = vector.shape_cast %220 : vector<8x1xf32> to vector<1x8x1xf32>
      %cst_84 = arith.constant dense<0.000000e+00> : vector<1xf32>
      %222 = vector.multi_reduction <add>, %221, %cst_84 [1, 2] : vector<1x8x1xf32> to vector<1xf32>
      %223 = vector.shape_cast %222 : vector<1xf32> to vector<1x1x1xf32>
      %224 = vector.extract %223[0, 0, 0] : f32 from vector<1x1x1xf32>
      %225 = vector.shape_cast %219 : vector<8x1xf32> to vector<1x8x1xf32>
      %cst_85 = arith.constant dense<0.000000e+00> : vector<1xf32>
      %226 = vector.multi_reduction <add>, %225, %cst_85 [1, 2] : vector<1x8x1xf32> to vector<1xf32>
      %227 = vector.shape_cast %226 : vector<1xf32> to vector<1x1x1xf32>
      %228 = vector.extract %227[0, 0, 0] : f32 from vector<1x1x1xf32>
      %229 = tpu.iota {dimensions = array<i32: 1>} : vector<8x128xi32>
      %230 = tpu.iota {dimensions = array<i32: 0>} : vector<8x128xi32>
      %c0_i32_86 = arith.constant 0 : i32
      %231 = vector.broadcast %c0_i32_86 : i32 to vector<8x128xi32>
      %232 = arith.cmpi eq, %230, %231 : vector<8x128xi32>
      %c0_i32_87 = arith.constant 0 : i32
      %233 = vector.broadcast %c0_i32_87 : i32 to vector<8x128xi32>
      %234 = arith.cmpi eq, %229, %233 : vector<8x128xi32>
      %235 = arith.andi %232, %234 : vector<8x128xi1>
      %cst_88 = arith.constant 0.000000e+00 : f32
      %236 = vector.broadcast %224 : f32 to vector<8x128xf32>
      %237 = vector.broadcast %cst_88 : f32 to vector<8x128xf32>
      %238 = arith.select %235, %236, %237 : vector<8x128xi1>, vector<8x128xf32>
      %c1_i32_89 = arith.constant 1 : i32
      %239 = vector.broadcast %c1_i32_89 : i32 to vector<8x128xi32>
      %240 = arith.cmpi eq, %229, %239 : vector<8x128xi32>
      %241 = arith.andi %232, %240 : vector<8x128xi1>
      %cst_90 = arith.constant 0.000000e+00 : f32
      %242 = vector.broadcast %228 : f32 to vector<8x128xf32>
      %243 = vector.broadcast %cst_90 : f32 to vector<8x128xf32>
      %244 = arith.select %241, %242, %243 : vector<8x128xi1>, vector<8x128xf32>
      %245 = arith.addf %238, %244 : vector<8x128xf32>
      %c0_91 = arith.constant 0 : index
      %c0_92 = arith.constant 0 : index
      %c0_93 = arith.constant 0 : index
      %246 = vector.load %arg20[%c0_91, %c0_92, %c0_93] : memref<1x8x128xf32, #tpu.memory_space<vmem>>, vector<1x8x128xf32>
      %247 = vector.shape_cast %246 : vector<1x8x128xf32> to vector<8x128xf32>
      %248 = vector.shape_cast %245 : vector<8x128xf32> to vector<1x8x128xf32>
      tpu.vector_store %arg20[%c0_91, %c0_92, %c0_93], %248 {strides = array<i32>} : memref<1x8x128xf32, #tpu.memory_space<vmem>>, vector<1x8x128xf32>,
    } else {
    }
    return
  }
  func.func @transform_0(%arg0: i32, %arg1: i32) -> (i32, i32, i32) {
    %c0_i32 = arith.constant 0 : i32
    %c0_i32_0 = arith.constant 0 : i32
    %c0_i32_1 = arith.constant 0 : i32
    return %arg0, %c0_i32, %c0_i32_0 : i32, i32, i32
  }
  func.func @transform_1(%arg0: i32, %arg1: i32) -> (i32, i32, i32) {
    %c0_i32 = arith.constant 0 : i32
    %c0_i32_0 = arith.constant 0 : i32
    %c0_i32_1 = arith.constant 0 : i32
    return %arg0, %c0_i32, %c0_i32_0 : i32, i32, i32
  }
  func.func @transform_2(%arg0: i32, %arg1: i32) -> (i32, i32) {
    %c0_i32 = arith.constant 0 : i32
    %c0_i32_0 = arith.constant 0 : i32
    %c0_i32_1 = arith.constant 0 : i32
    return %c0_i32, %c0_i32_0 : i32, i32
  }
  func.func @transform_3(%arg0: i32, %arg1: i32) -> (i32, i32) {
    %c0_i32 = arith.constant 0 : i32
    %c0_i32_0 = arith.constant 0 : i32
    %c0_i32_1 = arith.constant 0 : i32
    return %c0_i32, %c0_i32_0 : i32, i32
  }
  func.func @transform_4(%arg0: i32, %arg1: i32) -> (i32, i32, i32) {
    %c0_i32 = arith.constant 0 : i32
    %c0_i32_0 = arith.constant 0 : i32
    %c0_i32_1 = arith.constant 0 : i32
    return %arg0, %c0_i32, %c0_i32_0 : i32, i32, i32
  }
  func.func @transform_5(%arg0: i32, %arg1: i32) -> (i32, i32, i32) {
    %c0_i32 = arith.constant 0 : i32
    %c0_i32_0 = arith.constant 0 : i32
    %c0_i32_1 = arith.constant 0 : i32
    return %arg1, %c0_i32, %c0_i32_0 : i32, i32, i32
  }
  func.func @transform_6(%arg0: i32, %arg1: i32) -> (i32, i32, i32) {
    %c0_i32 = arith.constant 0 : i32
    %c0_i32_0 = arith.constant 0 : i32
    %c0_i32_1 = arith.constant 0 : i32
    return %arg1, %c0_i32, %c0_i32_0 : i32, i32, i32
  }
  func.func @transform_7(%arg0: i32, %arg1: i32) -> (i32, i32, i32) {
    %c0_i32 = arith.constant 0 : i32
    %c0_i32_0 = arith.constant 0 : i32
    %c0_i32_1 = arith.constant 0 : i32
    return %arg1, %c0_i32, %c0_i32_0 : i32, i32, i32
  }
  func.func @transform_8(%arg0: i32, %arg1: i32) -> (i32, i32, i32) {
    %c0_i32 = arith.constant 0 : i32
    %c0_i32_0 = arith.constant 0 : i32
    %c0_i32_1 = arith.constant 0 : i32
    return %arg1, %c0_i32, %c0_i32_0 : i32, i32, i32
  }
  func.func @transform_9(%arg0: i32, %arg1: i32) -> (i32, i32, i32) {
    %c0_i32 = arith.constant 0 : i32
    %c0_i32_0 = arith.constant 0 : i32
    %c0_i32_1 = arith.constant 0 : i32
    return %arg1, %c0_i32, %c0_i32_0 : i32, i32, i32
  }
  func.func @transform_10(%arg0: i32, %arg1: i32) -> (i32, i32, i32) {
    %c0_i32 = arith.constant 0 : i32
    %c0_i32_0 = arith.constant 0 : i32
    %c0_i32_1 = arith.constant 0 : i32
    return %arg1, %c0_i32, %c0_i32_0 : i32, i32, i32
  }
  func.func @transform_11(%arg0: i32, %arg1: i32) -> (i32, i32, i32) {
    %c0_i32 = arith.constant 0 : i32
    %c0_i32_0 = arith.constant 0 : i32
    %c0_i32_1 = arith.constant 0 : i32
    return %arg1, %c0_i32, %c0_i32_0 : i32, i32, i32
  }
  func.func @transform_12(%arg0: i32, %arg1: i32) -> (i32, i32) {
    %c0_i32 = arith.constant 0 : i32
    %c0_i32_0 = arith.constant 0 : i32
    %c0_i32_1 = arith.constant 0 : i32
    return %c0_i32, %c0_i32_0 : i32, i32
  }
  func.func @transform_13(%arg0: i32, %arg1: i32) -> (i32, i32) {
    %c0_i32 = arith.constant 0 : i32
    %c0_i32_0 = arith.constant 0 : i32
    %c0_i32_1 = arith.constant 0 : i32
    return %c0_i32, %c0_i32_0 : i32, i32
  }
  func.func @transform_14(%arg0: i32, %arg1: i32) -> (i32, i32) {
    %c0_i32 = arith.constant 0 : i32
    %c0_i32_0 = arith.constant 0 : i32
    %c0_i32_1 = arith.constant 0 : i32
    return %c0_i32, %c0_i32_0 : i32, i32
  }
  func.func @transform_15(%arg0: i32, %arg1: i32) -> (i32, i32) {
    %c0_i32 = arith.constant 0 : i32
    %c0_i32_0 = arith.constant 0 : i32
    %c0_i32_1 = arith.constant 0 : i32
    return %c0_i32, %c0_i32_0 : i32, i32
  }
  func.func @transform_16(%arg0: i32, %arg1: i32) -> (i32, i32) {
    %c0_i32 = arith.constant 0 : i32
    %c0_i32_0 = arith.constant 0 : i32
    return %arg0, %c0_i32 : i32, i32
  }
  func.func @transform_17(%arg0: i32, %arg1: i32) -> (i32, i32) {
    %c0_i32 = arith.constant 0 : i32
    %c0_i32_0 = arith.constant 0 : i32
    return %arg0, %c0_i32 : i32, i32
  }
  func.func @transform_18(%arg0: i32, %arg1: i32) -> (i32, i32, i32) {
    %c0_i32 = arith.constant 0 : i32
    %c0_i32_0 = arith.constant 0 : i32
    %c0_i32_1 = arith.constant 0 : i32
    return %arg0, %c0_i32, %c0_i32_0 : i32, i32, i32
  }
}

</mosaic_0001>

<bundles_post_ra>
// kernel: classifier_forward.1
= control target key start
LH: loop header
LB: loop body
LE: loop exit
PB: predicated region body
PF: predicated region fallthrough
CT: control target
= control target key end

     0   :  { %s4669_s0 = inlined_call_operand.vmem [shape: f32[2,8,32], index: 0, kind: input, shape index: {}]   ;;  %s4670_s1 = inlined_call_operand.vmem [shape: f32[2,8,32], index: 1, kind: input, shape index: {}]   ;;  %s4671_s2 = inlined_call_operand.vmem [shape: f32[8,32], index: 2, kind: input, shape index: {}]   ;;  %s4672_s3 = inlined_call_operand.vmem [shape: f32[2,32], index: 3, kind: input, shape index: {}]   ;;  %s4673_s4 = inlined_call_operand.vmem [shape: f32[2,1,8], index: 4, kind: input, shape index: {}]   ;;  %s4674_s5 = inlined_call_operand.vmem [shape: bf16[2,32,96], index: 5, kind: input, shape index: {}]   ;;  %s4675_s6 = inlined_call_operand.vmem [shape: f32[2,1,96], index: 6, kind: input, shape index: {}]   ;;  %s4676_s7 = inlined_call_operand.vmem [shape: bf16[2,32,32], index: 7, kind: input, shape index: {}]   ;;  %s4677_s8 = inlined_call_operand.vmem [shape: f32[2,6,32], index: 8, kind: input, shape index: {}]   ;;  %s4678_s9 = inlined_call_operand.vmem [shape: bf16[2,32,64], index: 9, kind: input, shape index: {}]   ;;  %s4679_s10 = inlined_call_operand.vmem [shape: f32[2,1,64], index: 10, kind: input, shape index: {}]   ;;  %s4680_s11 = inlined_call_operand.vmem [shape: bf16[2,64,32], index: 11, kind: input, shape index: {}]   ;;  %s4681_s12 = inlined_call_operand.vmem [shape: bf16[32,32], index: 12, kind: input, shape index: {}]   ;;  %s4682_s13 = inlined_call_operand.vmem [shape: f32[3,32], index: 13, kind: input, shape index: {}]   ;;  %s4683_s14 = inlined_call_operand.vmem [shape: bf16[32,128], index: 14, kind: input, shape index: {}]   ;;  %s4684_s15 = inlined_call_operand.vmem [shape: f32[1,128], index: 15, kind: input, shape index: {}]   ;;  %s4685_s16 = inlined_call_operand.vmem [shape: s32[16,1], index: 16, kind: input, shape index: {}]   ;;  %s4686_s17 = inlined_call_operand.hbm [shape: f32[16,128], index: 17, kind: output, shape index: {0}]   ;;  %s4687_s18 = inlined_call_operand.vmem [shape: f32[2,8,128], index: 18, kind: output, shape index: {1}]  }
   0x1   :  { %4707 = sst [smem:[#allocation20_spill]] %s4669_s0 }
   0x2   :  { %4708 = sst [smem:[#allocation21_spill]] %s4670_s1 }
   0x3   :  { %4709 = sst [smem:[#allocation22_spill]] %s4671_s2 }
   0x4   :  { %4710 = sst [smem:[#allocation23_spill]] %s4672_s3 }
   0x5   :  { %4711 = sst [smem:[#allocation24_spill]] %s4673_s4 }
   0x6   :  { %4712 = sst [smem:[#allocation25_spill]] %s4674_s5 }
   0x7   :  { %4713 = sst [smem:[#allocation26_spill]] %s4676_s7 }
   0x8   :  { %4714 = sst [smem:[#allocation27_spill]] %s4681_s12 }
   0x9   :  { %4715 = sst [smem:[#allocation28_spill]] %s4682_s13 }
   0xa   :  { %4716 = sst [smem:[#allocation29_spill]] %s4683_s14 }
   0xb   :  { %4717 = sst [smem:[#allocation30_spill]] %s4684_s15 }
   0xc   :  { %4718 = sst [smem:[#allocation31_spill]] %s4686_s17 }
   0xd   :  { %24 = vsyncpa [#allocation4], 0 }
   0xe   :  { %26 = vsyncpa [#allocation4 + $0x1], 0  ;;  %s4151_s27 = smov 0   ;;  %s4153_s28 = smov 0  }
   0xf   :  { %s4155_s29 = smov 0   ;;  %s4157_s30 = smov 0  }
  0x10   :  { %s4159_s0 = smov 0   ;;  %s4161_s19 = smov 0  }
  0x11   :  { %s4163_s1 = smov 0   ;;  %s4165_s20 = smov 0  }
  0x12 LB: > { %4719 = sst [smem:[#allocation6_spill]] %s4013_s27  ;;  %s3643_s21 = sadd.s32 4294967295, %s4041_s20   ;;  %s4041_s20 = sphi %s4165_s20, %s32_s20   ;;  %s4037_s1 = sphi %s4163_s1, %s4768_s1   ;;  %s4033_s19 = sphi %s4161_s19, %s4767_s19   ;;  %s4029_s0 = sphi %s4159_s0, %s4766_s0   ;;  %s4025_s30 = sphi %s4157_s30, %s4765_s30   ;;  %s4021_s29 = sphi %s4155_s29, %s4764_s29   ;;  %s4017_s28 = sphi %s4153_s28, %s4763_s28   ;;  %s4013_s27 = sphi %s4151_s27, %s4762_s27  }
  0x13   : > { %4720 = sst [smem:[#allocation7_spill]] %s4017_s28  ;;  %s3644_s22 = sadd.s32 4294967294, %s4041_s20  }
  0x14   : > { %4721 = sst [smem:[#allocation8_spill]] %s4021_s29  ;;  %s41_s2 = sadd.s32 1, %s4033_s19 }
  0x15   : > { %4722 = sst [smem:[#allocation9_spill]] %s4025_s30  ;;  %p42_p0 = scmp.ge.s32.totalorder %s41_s2, 2 }
  0x16   : > { %4723 = sst [smem:[#allocation10_spill]] %s4029_s0  ;;  %s44_s23 = sadd.s32 1, %s4037_s1 }
  0x17   : > { %4724 = sst [smem:[#allocation11_spill]] %s4033_s19  ;;  %p473_p1 = scmp.ne.s32.totalorder %s4021_s29, %s4017_s28 }
  0x18   : > { %4725 = sst [smem:[#allocation12_spill]] %s4037_s1  ;;  %p474_p2 = scmp.eq.s32.totalorder %s3643_s21, 3 }
  0x19   : > { %4726 = sst [smem:[#allocation13_spill]] %s4041_s20  ;;  %s4770_s2 = smov (%p42_p0, %s41_s2), 0 }
  0x1a   : > { %4727 = sst [smem:[#allocation14_spill]] %s4770_s2  ;;  %s4772_s23 = smov (!%p42_p0, %s44_s23), %s4037_s1 }
  0x1b   : > { %p4200_p3 = por %p474_p2, %p473_p1  ;;  %p479_p4 = scmp.ne.s32.totalorder %s4017_s28, %s4013_s27 }
  0x1c   : > { %p46_p5 = scmp.ge.s32.totalorder %s4772_s23, 2  ;;  %p480_p6 = scmp.eq.s32.totalorder %s3644_s22, 3 }
  0x1d   : > { %s4728_s24 = scalar_select %p4200_p3, 1, 0 }
  0x1e   : > { %p3647_p7 = scmp.ge.s32.totalorder %s4041_s20, 1  ;;  %p620_p8 = scmp.lt.s32.totalorder %s4041_s20, 5 }
  0x1f   : > { %4729 = sst [smem:[#allocation15_spill]] %s4728_s24  ;;  %s4774_s23 = smov (%p46_p5, %s4772_s23), 0 }
  0x20   : > { %4730 = sst [smem:[#allocation16_spill]] %s4774_s23  ;;  %p4210_p9 = por %p480_p6, %p479_p4 }
  0x21   : > { %p621_p10 = pnand %p3647_p7, %p620_p8  ;;  %s460_s26 = ssub.s32 %s4037_s1, %s4774_s23 }
  0x22   : > { %s4731_s25 = scalar_select %p4210_p9, 1, 0 }
  0x23   : > { %s463_s21 = sadd.s32 1, %s4021_s29  ;;  %p461_p11 = scmp.eq.s32.totalorder %s460_s26, 0 }
  0x24   : > { %4732 = sst [smem:[#allocation17_spill]] %s4731_s25  ;;  %624 = sbr.rel (%p621_p10) target bundleno = 4842 (0x12ea), region = 88 }
  0x25   : > { %s4218_s2 = scalar_select %p461_p11, %s4021_s29, %s463_s21  }
  0x27   : > { %4733 = sst [smem:[#allocation18_spill]] %s4218_s2 }
  0x29   : > { %s4692_s22 = sand.u32 1, %s4017_s28   ;;  %p718_p12 = scmp.lt.s32.totalorder %s4029_s0, 1 }
  0x2a   : > { %s4224_s19 = sshll.u32 %s4692_s22, 3  ;;  %p729_p13 = scmp.lt.s32.totalorder %s4025_s30, 1 }
  0x2b   : > { %s4228_s25 = scalar_select %p718_p12, %s4029_s0, 1 }
  0x2c   : > { %s4231_s26 = scalar_select %p729_p13, %s4025_s30, 1 }
  0x2d   : > { %s4234_s21 = sshll.u32 %s4228_s25, 3  ;;  %s4735_s27 = sld [smem:[#allocation20_spill]] }
  0x2e   : > { %s4736_s28 = sld [smem:[#allocation21_spill]]  ;;  %s3706_s15 = sshll.u32 %s4231_s26, 4 }
  0x2f   : > { %s4737_s5 = sld [smem:[#allocation25_spill]]  ;;  %s4267_s17 = scalar_lea.vmem %s4678_s9, %s3706_s15 }
  0x30   : > { %s4738_s7 = sld [smem:[#allocation26_spill]]  ;;  %s3709_s12 = sshll.u32 %s4231_s26, 5 }
  0x31   : > { %s762_s22 = scalar_lea.vmem %s4685_s16, %s4234_s21  ;;  %s4286_s29 = scalar_lea.vmem %s4680_s11, %s3709_s12 }
  0x32   : > { %s4740_s24 = sld [smem:[#allocation9_spill]] }
  0x33   : > { %s721_s20 = scalar_lea.vmem %s4735_s27, %s4234_s21  ;;  %s3655_s27 = sshll.u32 %s4231_s26, 3 }
  0x34   : > { %s725_s0 = scalar_lea.vmem %s4736_s28, %s4234_s21  ;;  %s4272_s13 = scalar_lea.vmem %s4677_s8, %s3655_s27 }
  0x35   : > { %s4256_s3 = scalar_lea.vmem %s4737_s5, %s3706_s15  ;;  %s766_s28 = scalar_lea.vmem %s4687_s18, %s4234_s21 }
  0x36   : > { %s4261_s4 = scalar_lea.vmem %s4738_s7, %s3706_s15  ;;  %s711_s27 = scalar_lea.vmem [#allocation3], %s4224_s19 }
  0x37   : > { %4739 = sst [smem:[#allocation19_spill]] %s4261_s4 }
  0x38   : > { %p3662_p0 = scmp.ne.s32.totalorder %s4740_s24, 0 }
  0x39   : > { %s4741_s23 = sld [smem:[#allocation22_spill]] (!%p3662_p0) }
  0x3a   : > { %771 = sbr.rel (%p3662_p0) target bundleno = 396 (0x18c), region = 92  ;;  %s4742_s7 = sld [smem:[#allocation23_spill]] (!%p3662_p0) }
  0x3f   : > { %v772_v0 = vld [vmem:[%s721_s20] sm:$0xff]  ;;  %vm779_vm0 = vcmask 261120  }
  0x40   : > { %v773_v1 = vld [vmem:[%s725_s0] sm:$0xff] }
  0x41   : > { %v775_v2 = vld [vmem:[%s4741_s23] sm:$0xff]  ;;  %v774_v3 = vadd.f32 %v773_v1, %v772_v0 }
  0x42   : > { %v3663_v20 = vld [vmem:[%s4742_s7] ss:$0 sm:$0xff]  ;;  %v3664_v23 = vld [vmem:[%s4742_s7 + $0x1] ss:$0 sm:$0xff] }
  0x43   : > { %v776_v4 = vadd.f32 %v775_v2, %v774_v3 }
  0x45   : > { %v780_v5 = vsel %vm779_vm0, %v776_v4, 0.0 }
  0x46   : > { %781 = vadd.xlane.f32.xlu0 %v780_v5 }
  0xcf   : > { %v782_v6 = vpop.xlane.xlu0 %781 }
  0xd0   : > { %v784_v7 = vmul.f32 0.03125, %v782_v6 }
  0xd2   : > { %v785_v8 = vsub.f32 %v776_v4, %v784_v7 }
  0xd4   : > { %v786_v9 = vmul.f32 %v785_v8, %v785_v8  ;;  %v805_v21 = vmul.f32 %v3663_v20, %v785_v8 }
  0xd6   : > { %v787_v10 = vsel %vm779_vm0, %v786_v9, 0.0 }
  0xd7   : > { %788 = vadd.xlane.f32.xlu0 %v787_v10 }
 0x160   : > { %v789_v11 = vpop.xlane.xlu0 %788 }
 0x161   : > { %v790_v12 = vmul.f32 0.03125, %v789_v11 }
 0x163   : > { %v791_v13 = vmul.f32 1.032258, %v790_v12 }
 0x165   : > { %3901 = vrsqrt.f32 %v791_v13  ;;  %vm794_vm1 = vcmp.eq.f32.partialorder %v791_v13, inf  ;;  %v797_v16 = vand.u32 2147483648, %v791_v13  ;;  %vm796_vm2 = vcmp.eq.f32.partialorder %v791_v13, 0.0 }
 0x172   : > { %v3902_v14 = vpop.eup %3901 }
 0x173   : > { %v793_v15 = vmul.f32 %v3902_v14, %v791_v13 }
 0x175   : > { %v795_v17 = vsel %vm794_vm1, %v791_v13, %v793_v15 }
 0x176   : > { %v798_v18 = vsel %vm796_vm2, %v797_v16, %v795_v17 }
 0x177   : > { %v799_v19 = vadd.f32 1e-06, %v798_v18 }
 0x179   : > { %3903 = vrcp.f32 %v799_v19 }
 0x186   : > { %v3904_v22 = vpop.eup %3903 }
 0x187   : > { %v806_v24 = vmul.f32 %v3904_v22, %v805_v21 }
 0x189   : > { %v811_v25 = vadd.f32 %v3664_v23, %v806_v24 }
 0x18b   : > { %812 = vst.msk [vmem:[#allocation2] sm:$0xff] %vm779_vm0, %v811_v25 }
 0x18c PF: > { %v3905_v26 = vld [vmem:[%s4256_s3 + $0x8] sm:$0xff]   ;;  %v4043_v27 = vmov 0.0   ;;  %v3906_v28 = vld [vmem:[%s4256_s3] sm:$0xff]   ;;  %vm4044_vm3 = vmmov 0   ;;  %vm839_vm4 = vcmask 261120   ;;  %s4743_s23 = scalar_lea.vmem %s4675_s6, %s4231_s26  ;;  %s4045_s30 = smov 112   ;;  %v891_v40 = vlaneseq }
 0x18d   : > { %3738 = vmatprep.subr.bf16.mxu0 %v4043_v27  ;;  %3746 = vmatprep.subr.bf16.mxu1 %v4043_v27  ;;  %v3665_v31 = vld [vmem:[%s4743_s23] ss:$0 sm:$0xff]  ;;  %s4046_s15 = smov 96   ;;  %v4047_v38 = vmov 1983009808   ;;  %s4050_s2 = smov 64  }
 0x18e   : > { %3739 = vmatpush3.bf16.msra.mxu0 %v3905_v26  ;;  %3742 = vmatprep.mubr.msk.bf16.mxu0 %vm4044_vm3, %v4043_v27  ;;  %v889_v39 = vunpack.c.l.s4 %v4047_v38  ;;  %v4048_v41 = vmov 1934713408   ;;  %v4332_v44 = vshrl.u32 %v891_v40, 7  ;;  %vm1834_vm5 = vcmask 130048   ;;  %s4744_s1 = sld [smem:[#allocation24_spill]]  ;;  %s4051_s5 = smov 16  }
 0x18f   : > { %3740 = vmatprep.subr.bf16.mxu0 %v4043_v27  ;;  %3748 = vmatprep.mubr.msk.bf16.mxu1 %vm4044_vm3, %v4043_v27  ;;  %v920_v42 = vunpack.c.l.s4 %v4048_v41  ;;  %vm1931_vm6 = vcmask 64512   ;;  %s4747_s12 = scalar_lea.vmem %s4679_s10, %s4231_s26  ;;  %vm3101_vm9 = vcmask 523264   ;;  %s4748_s26 = sld [smem:[#allocation9_spill]] }
 0x190   : > { %v890_v43 = vunpack.c.0.s8 %v889_v39 }
 0x191   : > { %v921_v46 = vunpack.c.0.s8 %v920_v42 }
 0x192   : > { %v814_v29 = vld [vmem:[#allocation2] sm:$0xff]  ;;  %3741 = vmatpush3.bf16.msra.mxu0 %v3906_v28  ;;  %v4335_v47 = vsub.s32 %v890_v43, %v4332_v44 }
 0x193   : > { %v815_v30 = vpack.c.bf16 %v814_v29, %v814_v29  ;;  %3770 = vmatprep.subr.bf16.mxu0 %v4043_v27  ;;  %v4342_v53 = vsub.s32 %v921_v46, %v4332_v44 }
 0x194   : > { %s4745_s4 = scalar_lea.vmem %s4744_s1, %s4228_s25  ;;  %s4746_s25 = sld [smem:[#allocation19_spill]] }
 0x195   : > { %3743 = vmatmul.mubr.msk.bf16.vlgmr.msra.gmra.mxu0 %vm839_vm4, %v815_v30  ;;  %p3692_p1 = scmp.ne.s32.totalorder %s4748_s26, 1 }
 0x196   : > { %3774 = vmatprep.mubr.msk.bf16.mxu0 %vm4044_vm3, %v4043_v27  ;;  %s4749_s3 = sld [smem:[#allocation27_spill]] (!%p3692_p1) }
 0x197   : > { %s4751_s1 = sld [smem:[#allocation29_spill]] (!%p3692_p1) }
 0x255   : > { %v877_v32 = vpop.f32.mrf.mxu0 }
 0x256   : > { %v4324_v33 = vadd.f32 %v3665_v31, %v877_v32 }
 0x257   : > { %v3744_v34 = vpop.f32.mrf.mxu0 }
 0x258   : > { %884 = vrot.lane.b32.xlu0 %v4324_v33, %s4045_s30 }
 0x259   : > { %v880_v35 = vpop.f32.mrf.mxu0 }
 0x25b   : > { %v3745_v36 = vpop.f32.mrf.mxu0 }
 0x25c   : > { %961 = vrot.lane.b32.xlu0 %v4324_v33, %s4046_s15 }
 0x2ca   : > { %v4328_v37 = vpop.permute.xlu0 %884 }
 0x2cb   : > { %963 = vrot.lane.b32.xlu1 %v4328_v37, %s4046_s15 }
 0x2ce   : > { %v962_v45 = vpop.permute.xlu0 %961 }
 0x2cf   : > { %v967_v48 = vcombine.high %v962_v45, %v4043_v27  ;;  %v974_v50 = vrot.slane %v962_v45, %v4335_v47 }
 0x2d1   : > { %v981_v54 = vrot.slane %v967_v48, %v4335_v47 }
 0x33d   : > { %v964_v49 = vpop.permute.xlu1 %963 }
 0x33e   : > { %v982_v51 = vcombine.high %v964_v49, %v4043_v27  ;;  %v989_v52 = vrot.slane %v964_v49, %v4335_v47 }
 0x340   : > { %v996_v55 = vrot.slane %v982_v51, %v4335_v47  ;;  %v997_v56 = vcombine.low %v974_v50, %v989_v52  ;;  %v998_v57 = vcombine.high %v974_v50, %v989_v52 }
 0x342   : > { %v1012_v58 = vrot.slane %v998_v57, %v4342_v53  ;;  %v1005_v59 = vrot.slane %v997_v56, %v4342_v53  ;;  %v1013_v60 = vcombine.low %v981_v54, %v996_v55  ;;  %v1014_v61 = vcombine.high %v981_v54, %v996_v55 }
 0x344   : > { %v1035_v62 = vpack.c.bf16 %v1012_v58, %v1012_v58  ;;  %v1033_v63 = vpack.c.bf16 %v1005_v59, %v1005_v59  ;;  %v1030_v0 = vcombine.high %v1012_v58, %v4043_v27  ;;  %v1029_v1 = vcombine.high %v1005_v59, %v4043_v27 }
 0x345   : > { %v1021_v2 = vrot.slane %v1013_v60, %v4342_v53  ;;  %v1028_v6 = vrot.slane %v1014_v61, %v4342_v53 }
 0x346   : > { %1208 = vxpose.xlu0.c.b16.start.end [1/1] (short) (narrow) %v1035_v62, 16  ;;  %1176 = vxpose.xlu1.c.b16.start.end [1/1] (short) (narrow) %v1033_v63, 16  ;;  %v1036_v3 = vpack.c.bf16 %v1030_v0, %v1030_v0  ;;  %v1034_v4 = vpack.c.bf16 %v1029_v1, %v1029_v1 }
 0x347   : > { %v1031_v5 = vcombine.high %v1021_v2, %v4043_v27  ;;  %v1037_v7 = vpack.c.bf16 %v1021_v2, %v1021_v2  ;;  %v1032_v9 = vcombine.high %v1028_v6, %v4043_v27  ;;  %v1039_v10 = vpack.c.bf16 %v1028_v6, %v1028_v6 }
 0x349   : > { %v1038_v8 = vpack.c.bf16 %v1031_v5, %v1031_v5  ;;  %v1040_v11 = vpack.c.bf16 %v1032_v9, %v1032_v9 }
 0x34a   : > { %1224 = vxpose.xlu1.c.b16.start.end [1/1] (short) (narrow) %v1036_v3, 16  ;;  %1192 = vxpose.xlu0.c.b16.start.end [1/1] (short) (narrow) %v1034_v4, 16 }
 0x34e   : > { %1240 = vxpose.xlu0.c.b16.start.end [1/1] (short) (narrow) %v1037_v7, 16  ;;  %1256 = vxpose.xlu1.c.b16.start.end [1/1] (short) (narrow) %v1038_v8, 16 }
 0x352   : > { %1272 = vxpose.xlu0.c.b16.start.end [1/1] (short) (narrow) %v1039_v10, 16  ;;  %1288 = vxpose.xlu1.c.b16.start.end [1/1] (short) (narrow) %v1040_v11, 16  ;;  %v4049_v11 = vmov 0  }
 0x3a8   : > { %v1216_v12 = vpop.trf.xlu0  ;;  %v1184_v13 = vpop.trf.xlu1 }
 0x3a9   : > { %v1308_v23 = vshrl.u32 %v1184_v13, 16  ;;  %v1316_v34 = vshrl.u32 %v1216_v12, 16 }
 0x3ac   : > { %v1232_v14 = vpop.trf.xlu1  ;;  %v1200_v15 = vpop.trf.xlu0 }
 0x3ad   : > { %v1309_v21 = vshrl.u32 %v1200_v15, 16  ;;  %v1306_v22 = vpack.i.b16 %v1200_v15, %v1184_v13  ;;  %v1317_v24 = vshrl.u32 %v1232_v14, 16  ;;  %v1314_v29 = vpack.i.b16 %v1232_v14, %v1216_v12 }
 0x3af   : > { %v1310_v35 = vpack.i.b16 %v1309_v21, %v1308_v23  ;;  %v1318_v39 = vpack.i.b16 %v1317_v24, %v1316_v34 }
 0x3b0   : > { %v1248_v16 = vpop.trf.xlu0  ;;  %v1264_v17 = vpop.trf.xlu1 }
 0x3b1   : > { %v1324_v18 = vshrl.u32 %v1248_v16, 16  ;;  %v1322_v19 = vpack.i.b16 %v1264_v17, %v1248_v16  ;;  %v1325_v20 = vshrl.u32 %v1264_v17, 16 }
 0x3b3   : > { %v1326_v25 = vpack.i.b16 %v1325_v20, %v1324_v18  ;;  %v1336_v30 = vcombine.low %v1306_v22, %v1322_v19  ;;  %v1337_v49 = vcombine.high %v1306_v22, %v1322_v19 }
 0x3b4   : > { %v1280_v26 = vpop.trf.xlu0  ;;  %v1296_v28 = vpop.trf.xlu1 }
 0x3b5   : > { %v1332_v31 = vshrl.u32 %v1280_v26, 16  ;;  %v1330_v32 = vpack.i.b16 %v1296_v28, %v1280_v26  ;;  %v1333_v36 = vshrl.u32 %v1296_v28, 16  ;;  %v1404_v41 = vcombine.low %v1310_v35, %v1326_v25 }
 0x3b6   : > { %v1344_v45 = vrot.slane %v1336_v30, %v4335_v47  ;;  %v1405_v58 = vcombine.high %v1310_v35, %v1326_v25  ;;  %v1351_v60 = vrot.slane %v1337_v49, %v4335_v47  ;;  %v902_v25 = vcombine.high %v4328_v37, %v4043_v27 }
 0x3b7   : > { %v1352_v38 = vcombine.low %v1314_v29, %v1330_v32  ;;  %v1334_v42 = vpack.i.b16 %v1333_v36, %v1332_v31  ;;  %v1353_v43 = vcombine.high %v1314_v29, %v1330_v32  ;;  %v1412_v52 = vrot.slane %v1404_v41, %v4335_v47 }
 0x3b8   : > { %v1419_v2 = vrot.slane %v1405_v58, %v4335_v47  ;;  %v887_v26 = vcombine.high %v4324_v33, %v4043_v27  ;;  %v916_v30 = vrot.slane %v902_v25, %v4335_v47  ;;  %v909_v32 = vrot.slane %v4328_v37, %v4335_v47 }
 0x3b9   : > { %v1360_v46 = vrot.slane %v1352_v38, %v4335_v47  ;;  %v1420_v48 = vcombine.low %v1318_v39, %v1334_v42  ;;  %v1421_v51 = vcombine.high %v1318_v39, %v1334_v42  ;;  %v1367_v57 = vrot.slane %v1353_v43, %v4335_v47 }
 0x3ba   : > { %v901_v31 = vrot.slane %v887_v26, %v4335_v47  ;;  %v894_v36 = vrot.slane %v4324_v33, %v4335_v47 }
 0x3bb   : > { %v1368_v50 = vcombine.low %v1344_v45, %v1360_v46  ;;  %v1428_v54 = vrot.slane %v1420_v48, %v4335_v47  ;;  %v1369_v56 = vcombine.high %v1344_v45, %v1360_v46  ;;  %v1435_v63 = vrot.slane %v1421_v51, %v4335_v47 }
 0x3bc   : > { %v1384_v1 = vcombine.low %v1351_v60, %v1367_v57  ;;  %v1385_v6 = vcombine.high %v1351_v60, %v1367_v57  ;;  %v933_v38 = vcombine.low %v901_v31, %v916_v30  ;;  %v934_v39 = vcombine.high %v901_v31, %v916_v30 }
 0x3bd   : > { %v1376_v55 = vrot.slane %v1368_v50, %v4342_v53  ;;  %v1436_v59 = vcombine.low %v1412_v52, %v1428_v54  ;;  %v1437_v62 = vcombine.high %v1412_v52, %v1428_v54  ;;  %v1383_v0 = vrot.slane %v1369_v56, %v4342_v53 }
 0x3be   : > { %v1452_v4 = vcombine.low %v1419_v2, %v1435_v63  ;;  %v1392_v5 = vrot.slane %v1384_v1, %v4342_v53  ;;  %v1453_v8 = vcombine.high %v1419_v2, %v1435_v63  ;;  %v1399_v9 = vrot.slane %v1385_v6, %v4342_v53 }
 0x3bf   : > { %1472 = vxpose.xlu0.c.b16.start.end [1/1] (short) (narrow) %v1376_v55, 16  ;;  %v1444_v61 = vrot.slane %v1436_v59, %v4342_v53  ;;  %v1451_v3 = vrot.slane %v1437_v62, %v4342_v53  ;;  %v1400_v12 = vcombine.high %v1376_v55, %v4049_v11  ;;  %v1401_v14 = vcombine.high %v1383_v0, %v4049_v11 }
 0x3c0   : > { %v1460_v7 = vrot.slane %v1452_v4, %v4342_v53  ;;  %v1467_v10 = vrot.slane %v1453_v8, %v4342_v53  ;;  %v1402_v16 = vcombine.high %v1392_v5, %v4049_v11  ;;  %v1403_v18 = vcombine.high %v1399_v9, %v4049_v11 }
 0x3c1   : > { %1488 = vxpose.xlu1.c.b16.start.end [1/1] (short) (narrow) %v1444_v61, 16  ;;  %v1468_v13 = vcombine.high %v1444_v61, %v4049_v11  ;;  %v1469_v15 = vcombine.high %v1451_v3, %v4049_v11  ;;  %v917_v41 = vcombine.low %v894_v36, %v909_v32  ;;  %v918_v42 = vcombine.high %v894_v36, %v909_v32 }
 0x3c2   : > { %v1470_v17 = vcombine.high %v1460_v7, %v4049_v11  ;;  %v1471_v19 = vcombine.high %v1467_v10, %v4049_v11  ;;  %v941_v46 = vrot.slane %v933_v38, %v4342_v53  ;;  %v948_v48 = vrot.slane %v934_v39, %v4342_v53 }
 0x3c3   : > { %1536 = vxpose.xlu0.c.b16.start.end [1/1] (short) (narrow) %v1383_v0, 16  ;;  %v925_v49 = vrot.slane %v917_v41, %v4342_v53  ;;  %v932_v50 = vrot.slane %v918_v42, %v4342_v53 }
 0x3c4   : > { %v951_v52 = vcombine.high %v941_v46, %v4043_v27 }
 0x3c5   : > { %1552 = vxpose.xlu1.c.b16.start.end [1/1] (short) (narrow) %v1451_v3, 16  ;;  %v949_v56 = vcombine.high %v925_v49, %v4043_v27  ;;  %v950_v57 = vcombine.high %v932_v50, %v4043_v27  ;;  %v3670_v6 = vpack.c.bf16 %v948_v48, %v932_v50 }
 0x3c7   : > { %1600 = vxpose.xlu0.c.b16.start.end [1/1] (short) (narrow) %v1392_v5, 16  ;;  %v3671_v63 = vpack.c.bf16 %v951_v52, %v949_v56  ;;  %v3669_v5 = vpack.c.bf16 %v941_v46, %v925_v49 }
 0x3c9   : > { %1616 = vxpose.xlu1.c.b16.start.end [1/1] (short) (narrow) %v1460_v7, 16 }
 0x3cb   : > { %1664 = vxpose.xlu0.c.b16.start.end [1/1] (short) (narrow) %v1399_v9, 16 }
 0x3cd   : > { %1680 = vxpose.xlu1.c.b16.start.end [1/1] (short) (narrow) %v1467_v10, 16 }
 0x3cf   : > { %1504 = vxpose.xlu0.c.b16.start.end [1/1] (short) (narrow) %v1400_v12, 16 }
 0x3d1   : > { %1520 = vxpose.xlu1.c.b16.start.end [1/1] (short) (narrow) %v1468_v13, 16 }
 0x3d3   : > { %1568 = vxpose.xlu0.c.b16.start.end [1/1] (short) (narrow) %v1401_v14, 16 }
 0x3d5   : > { %1584 = vxpose.xlu1.c.b16.start.end [1/1] (short) (narrow) %v1469_v15, 16  ;;  %v1153_v15 = vrot.slane %v3671_v63, %v4335_v47 }
 0x3d7   : > { %1632 = vxpose.xlu0.c.b16.start.end [1/1] (short) (narrow) %v1402_v16, 16 }
 0x3d9   : > { %1648 = vxpose.xlu1.c.b16.start.end [1/1] (short) (narrow) %v1470_v17, 16 }
 0x3db   : > { %1696 = vxpose.xlu0.c.b16.start.end [1/1] (short) (narrow) %v1403_v18, 16 }
 0x3dd   : > { %1712 = vxpose.xlu1.c.b16.start.end [1/1] (short) (narrow) %v1471_v19, 16 }
 0x3e1   : > { %1043 = vrot.lane.b32.xlu1 %v4328_v37, %s4050_s2 }
 0x3e4   : > { %1041 = vrot.lane.b32.xlu0 %v4324_v33, %s4050_s2  ;;  %v952_v33 = vcombine.high %v948_v48, %v4043_v27  ;;  %s4750_s2 = sld [smem:[#allocation28_spill]] (!%p3692_p1) }
 0x3e6   : > { %v3672_v0 = vpack.c.bf16 %v952_v33, %v950_v57 }
 0x3e8   : > { %v1161_v16 = vrot.slane %v3672_v0, %v4335_v47 }
 0x3ea   : > { %v1162_v25 = vcombine.low %v1153_v15, %v1161_v16 }
 0x421   : > { %v1480_v20 = vpop.trf.xlu0 }
 0x423   : > { %v1496_v21 = vpop.trf.xlu1 }
 0x425   : > { %v1544_v22 = vpop.trf.xlu0 }
 0x426   : > { %v1728_v60 = vcombine.low %v1480_v20, %v1544_v22  ;;  %v1137_v22 = vrot.slane %v3670_v6, %v4335_v47  ;;  %v3675_v6 = vld [vmem:[%s4745_s4] ss:$0 sm:$0xff]  ;;  %s4752_s4 = smov (!%p3692_p1), %s4751_s1 }
 0x427   : > { %v1560_v23 = vpop.trf.xlu1 }
 0x428   : > { %v1777_v61 = vcombine.low %v1496_v21, %v1560_v23  ;;  %v1735_v10 = vrot.slane %v1728_v60, %v4335_v47  ;;  %v1129_v21 = vrot.slane %v3669_v5, %v4335_v47 }
 0x429   : > { %v1608_v24 = vpop.trf.xlu0 }
 0x42a   : > { %v1784_v12 = vrot.slane %v1777_v61, %v4335_v47  ;;  %v1138_v30 = vcombine.low %v1129_v21, %v1137_v22 }
 0x42b   : > { %v1624_v28 = vpop.trf.xlu1 }
 0x42c   : > { %v1145_v38 = vrot.slane %v1138_v30, %v4342_v53 }
 0x42d   : > { %v1672_v29 = vpop.trf.xlu0 }
 0x42e   : > { %v1744_v58 = vcombine.low %v1608_v24, %v1672_v29 }
 0x42f   : > { %v1688_v34 = vpop.trf.xlu1 }
 0x430   : > { %v1793_v2 = vcombine.low %v1624_v28, %v1688_v34  ;;  %v1751_v7 = vrot.slane %v1744_v58, %v4335_v47  ;;  %v1169_v34 = vrot.slane %v1162_v25, %v4342_v53 }
 0x431   : > { %v1512_v35 = vpop.trf.xlu0 }
 0x432   : > { %v1800_v17 = vrot.slane %v1793_v2, %v4335_v47  ;;  %v1172_v41 = vpack.i.b16 %v1169_v34, %v1145_v38 }
 0x433   : > { %v1528_v43 = vpop.trf.xlu1 }
 0x435   : > { %v1576_v45 = vpop.trf.xlu0 }
 0x436   : > { %v1736_v54 = vcombine.low %v1512_v35, %v1576_v45  ;;  %v1173_v45 = vshrl.u32 %v1145_v38, 16 }
 0x437   : > { %v1592_v37 = vpop.trf.xlu1 }
 0x438   : > { %v1785_v55 = vcombine.low %v1528_v43, %v1592_v37  ;;  %v1743_v3 = vrot.slane %v1736_v54, %v4335_v47  ;;  %v1174_v43 = vshrl.u32 %v1169_v34, 16 }
 0x439   : > { %v1640_v51 = vpop.trf.xlu0 }
 0x43a   : > { %v1792_v4 = vrot.slane %v1785_v55, %v4335_v47  ;;  %v1760_v18 = vcombine.low %v1735_v10, %v1743_v3  ;;  %v1175_v50 = vpack.i.b16 %v1174_v43, %v1173_v45 }
 0x43b   : > { %v1656_v59 = vpop.trf.xlu1 }
 0x43c   : > { %v1809_v19 = vcombine.low %v1784_v12, %v1792_v4  ;;  %v1767_v26 = vrot.slane %v1760_v18, %v4342_v53 }
 0x43d   : > { %v1704_v62 = vpop.trf.xlu0 }
 0x43e   : > { %v1752_v1 = vcombine.low %v1640_v51, %v1704_v62  ;;  %v1816_v28 = vrot.slane %v1809_v19, %v4342_v53 }
 0x43f   : > { %v1720_v9 = vpop.trf.xlu1 }
 0x440   : > { %v1759_v8 = vrot.slane %v1752_v1, %v4335_v47  ;;  %v1801_v13 = vcombine.low %v1656_v59, %v1720_v9 }
 0x442   : > { %v1768_v14 = vcombine.low %v1751_v7, %v1759_v8  ;;  %v1808_v20 = vrot.slane %v1801_v13, %v4335_v47 }
 0x444   : > { %v1817_v23 = vcombine.low %v1800_v17, %v1808_v20  ;;  %v1775_v24 = vrot.slane %v1768_v14, %v4342_v53 }
 0x446   : > { %v1824_v29 = vrot.slane %v1817_v23, %v4342_v53  ;;  %v1776_v31 = vcombine.low %v1767_v26, %v1775_v24 }
 0x448   : > { %v1825_v32 = vcombine.low %v1816_v28, %v1824_v29  ;;  %v1830_v39 = vshrl.u32 %v1776_v31, 16 }
 0x44a   : > { %v1828_v35 = vpack.i.b16 %v1825_v32, %v1776_v31  ;;  %v1831_v36 = vshrl.u32 %v1825_v32, 16 }
 0x44c   : > { %3747 = vmatpush3.bf16.msra.mxu1 %v1828_v35  ;;  %v1832_v42 = vpack.i.b16 %v1831_v36, %v1830_v39 }
 0x44d   : > { %3752 = vmatprep.subr.bf16.mxu1 %v4043_v27 }
 0x44f   : > { %3749 = vmatmul.mubr.msk.bf16.vlgmr.msra.gmra.mxu1 %vm1834_vm5, %v1172_v41 }
 0x450   : > { %3753 = vmatpush3.bf16.msra.mxu1 %v1832_v42  ;;  %3754 = vmatprep.mubr.msk.bf16.mxu1 %vm4044_vm3, %v4043_v27 }
 0x451   : > { %3758 = vmatprep.subr.bf16.mxu1 %v4043_v27 }
 0x453   : > { %v1044_v46 = vpop.permute.xlu1 %1043 }
 0x454   : > { %v1062_v48 = vcombine.high %v1044_v46, %v4043_v27  ;;  %v1069_v37 = vrot.slane %v1044_v46, %v4335_v47 }
 0x456   : > { %v1042_v49 = vpop.permute.xlu0 %1041  ;;  %v1076_v33 = vrot.slane %v1062_v48, %v4335_v47 }
 0x457   : > { %v1047_v51 = vcombine.high %v1042_v49, %v4043_v27  ;;  %v1054_v52 = vrot.slane %v1042_v49, %v4335_v47  ;;  %3755 = vmatmul.mubr.msk.bf16.vlgmr.msra.gmra.mxu1 %vm1834_vm5, %v1175_v50 }
 0x458   : > { %3760 = vmatprep.mubr.msk.bf16.mxu1 %vm4044_vm3, %v4043_v27 }
 0x459   : > { %v1061_v54 = vrot.slane %v1047_v51, %v4335_v47  ;;  %v1077_v55 = vcombine.low %v1054_v52, %v1069_v37  ;;  %v1078_v56 = vcombine.high %v1054_v52, %v1069_v37 }
 0x45b   : > { %v1085_v57 = vrot.slane %v1077_v55, %v4342_v53  ;;  %v1093_v58 = vcombine.low %v1061_v54, %v1076_v33  ;;  %v1092_v59 = vrot.slane %v1078_v56, %v4342_v53  ;;  %v1094_v60 = vcombine.high %v1061_v54, %v1076_v33 }
 0x45d   : > { %v1113_v61 = vpack.c.bf16 %v1085_v57, %v1085_v57  ;;  %v1109_v62 = vcombine.high %v1085_v57, %v4043_v27  ;;  %v1110_v63 = vcombine.high %v1092_v59, %v4043_v27  ;;  %v1101_v0 = vrot.slane %v1093_v58, %v4342_v53 }
 0x45e   : > { %v1115_v21 = vpack.c.bf16 %v1092_v59, %v1092_v59  ;;  %v1108_v22 = vrot.slane %v1094_v60, %v4342_v53 }
 0x45f   : > { %1956 = vxpose.xlu1.c.b16.start.end [1/1] (short) (narrow) %v1113_v61, 16  ;;  %v1114_v1 = vpack.c.bf16 %v1109_v62, %v1109_v62  ;;  %v1116_v2 = vpack.c.bf16 %v1110_v63, %v1110_v63  ;;  %v1111_v3 = vcombine.high %v1101_v0, %v4043_v27  ;;  %v1117_v23 = vpack.c.bf16 %v1101_v0, %v1101_v0 }
 0x460   : > { %v1112_v24 = vcombine.high %v1108_v22, %v4043_v27  ;;  %v1119_v25 = vpack.c.bf16 %v1108_v22, %v1108_v22 }
 0x461   : > { %1972 = vxpose.xlu0.c.b16.start.end [1/1] (short) (narrow) %v1114_v1, 16  ;;  %v1118_v4 = vpack.c.bf16 %v1111_v3, %v1111_v3 }
 0x462   : > { %v1120_v26 = vpack.c.bf16 %v1112_v24, %v1112_v24 }
 0x463   : > { %2004 = vxpose.xlu1.c.b16.start.end [1/1] (short) (narrow) %v1116_v2, 16 }
 0x467   : > { %2036 = vxpose.xlu1.c.b16.start.end [1/1] (short) (narrow) %v1118_v4, 16 }
 0x4c1   : > { %v1964_v28 = vpop.trf.xlu1 }
 0x4c2   : > { %v2088_v41 = vshrl.u32 %v1964_v28, 16 }
 0x4c3   : > { %v1980_v29 = vpop.trf.xlu0 }
 0x4c4   : > { %v2089_v42 = vshrl.u32 %v1980_v29, 16  ;;  %v2086_v45 = vpack.i.b16 %v1980_v29, %v1964_v28 }
 0x4c5   : > { %v2012_v30 = vpop.trf.xlu1 }
 0x4c6   : > { %v2090_v54 = vpack.i.b16 %v2089_v42, %v2088_v41  ;;  %v2097_v55 = vshrl.u32 %v2012_v30, 16 }
 0x4c9   : > { %v2044_v32 = vpop.trf.xlu1 }
 0x4ca   : > { %v2105_v43 = vshrl.u32 %v2044_v32, 16 }
 0x50f   : > { %v1872_v5 = vpop.f32.mrf.mxu1 }
 0x510   : > { %v1921_v7 = vmul.f32 0.25, %v1872_v5 }
 0x511   : > { %v3750_v8 = vpop.f32.mrf.mxu1 }
 0x512   : > { %v4441_v9 = vadd.f32 %v3675_v6, %v1921_v7 }
 0x513   : > { %v1875_v10 = vpop.f32.mrf.mxu1 }
 0x514   : > { %v1932_v12 = vsel %vm1931_vm6, %v4441_v9, -inf }
 0x515   : > { %1933 = vmax.xlane.f32.xlu0 %v1932_v12  ;;  %v3751_v13 = vpop.f32.mrf.mxu1 }
 0x517   : > { %v1915_v14 = vpop.f32.mrf.mxu1 }
 0x518   : > { %v1922_v15 = vmul.f32 0.25, %v1915_v14 }
 0x519   : > { %v3756_v16 = vpop.f32.mrf.mxu1 }
 0x51a   : > { %v4445_v17 = vadd.f32 %v3675_v6, %v1922_v15 }
 0x51b   : > { %v1918_v18 = vpop.f32.mrf.mxu1 }
 0x51c   : > { %v1935_v19 = vsel %vm1931_vm6, %v4445_v17, -inf }
 0x51d   : > { %1936 = vmax.xlane.f32.xlu1 %v1935_v19  ;;  %v3757_v20 = vpop.f32.mrf.mxu1 }
 0x542   : > { %1988 = vxpose.xlu0.c.b16.start.end [1/1] (short) (narrow) %v1115_v21, 16 }
 0x546   : > { %2020 = vxpose.xlu0.c.b16.start.end [1/1] (short) (narrow) %v1117_v23, 16 }
 0x54a   : > { %2052 = vxpose.xlu0.c.b16.start.end [1/1] (short) (narrow) %v1119_v25, 16  ;;  %2068 = vxpose.xlu1.c.b16.start.end [1/1] (short) (narrow) %v1120_v26, 16 }
 0x59e   : > { %v1934_v31 = vpop.xlane.xlu0 %1933 }
 0x59f   : > { %v1938_v19 = vsub.f32 %v4441_v9, %v1934_v31 }
 0x5a1   : > { %v1940_v26 = vmul.f32 1.442695, %v1938_v19 }
 0x5a3   : > { %3915 = vpow2.f32 %v1940_v26 }
 0x5a4   : > { %v1996_v34 = vpop.trf.xlu0 }
 0x5a5   : > { %v2096_v46 = vshrl.u32 %v1996_v34, 16  ;;  %v2094_v37 = vpack.i.b16 %v2012_v30, %v1996_v34 }
 0x5a6   : > { %v4451_v35 = vpop.xlane.xlu1 %1936 }
 0x5a7   : > { %v2098_v58 = vpack.i.b16 %v2097_v55, %v2096_v46  ;;  %v1939_v30 = vsub.f32 %v4445_v17, %v4451_v35 }
 0x5a8   : > { %v2028_v36 = vpop.trf.xlu0 }
 0x5a9   : > { %v2102_v38 = vpack.i.b16 %v2044_v32, %v2028_v36  ;;  %v2104_v39 = vshrl.u32 %v2028_v36, 16  ;;  %v1942_v34 = vmul.f32 1.442695, %v1939_v30 }
 0x5ab   : > { %v2106_v48 = vpack.i.b16 %v2105_v43, %v2104_v39  ;;  %v2116_v51 = vcombine.low %v2086_v45, %v2102_v38  ;;  %v2117_v10 = vcombine.high %v2086_v45, %v2102_v38  ;;  %3917 = vpow2.f32 %v1942_v34 }
 0x5ac   : > { %v2060_v49 = vpop.trf.xlu0  ;;  %v2076_v50 = vpop.trf.xlu1 }
 0x5ad   : > { %v2112_v52 = vshrl.u32 %v2060_v49, 16  ;;  %v2110_v33 = vpack.i.b16 %v2076_v50, %v2060_v49  ;;  %v2113_v56 = vshrl.u32 %v2076_v50, 16  ;;  %v2184_v59 = vcombine.low %v2090_v54, %v2106_v48 }
 0x5ae   : > { %v2124_v61 = vrot.slane %v2116_v51, %v4335_v47  ;;  %v2185_v18 = vcombine.high %v2090_v54, %v2106_v48  ;;  %v2131_v20 = vrot.slane %v2117_v10, %v4335_v47 }
 0x5af   : > { %v2132_v57 = vcombine.low %v2094_v37, %v2110_v33  ;;  %v2114_v60 = vpack.i.b16 %v2113_v56, %v2112_v52  ;;  %v2192_v1 = vrot.slane %v2184_v59, %v4335_v47  ;;  %v2133_v6 = vcombine.high %v2094_v37, %v2110_v33 }
 0x5b0   : > { %v2199_v25 = vrot.slane %v2185_v18, %v4335_v47  ;;  %v3916_v41 = vpop.eup %3915 }
 0x5b1   : > { %v2140_v62 = vrot.slane %v2132_v57, %v4335_v47  ;;  %v2200_v63 = vcombine.low %v2098_v58, %v2114_v60  ;;  %v2201_v12 = vcombine.high %v2098_v58, %v2114_v60  ;;  %v2147_v16 = vrot.slane %v2133_v6, %v4335_v47 }
 0x5b2   : > { %v1944_v17 = vsel %vm1931_vm6, %v3916_v41, 0.0 }
 0x5b3   : > { %v2148_v0 = vcombine.low %v2124_v61, %v2140_v62  ;;  %v2208_v2 = vrot.slane %v2200_v63, %v4335_v47  ;;  %v2149_v8 = vcombine.high %v2124_v61, %v2140_v62  ;;  %v2215_v22 = vrot.slane %v2201_v12, %v4335_v47 }
 0x5b4   : > { %v2164_v24 = vcombine.low %v2131_v20, %v2147_v16  ;;  %v2165_v43 = vcombine.high %v2131_v20, %v2147_v16 }
 0x5b5   : > { %v2156_v3 = vrot.slane %v2148_v0, %v4342_v53  ;;  %v2216_v4 = vcombine.low %v2192_v1, %v2208_v2  ;;  %v2217_v14 = vcombine.high %v2192_v1, %v2208_v2  ;;  %v2163_v15 = vrot.slane %v2149_v8, %v4342_v53 }
 0x5b6   : > { %v2232_v29 = vcombine.low %v2199_v25, %v2215_v22  ;;  %v2172_v9 = vrot.slane %v2164_v24, %v4342_v53  ;;  %v2233_v38 = vcombine.high %v2199_v25, %v2215_v22  ;;  %v2179_v45 = vrot.slane %v2165_v43, %v4342_v53 }
 0x5b7   : > { %2252 = vxpose.xlu0.c.b16.start.end [1/1] (short) (narrow) %v2156_v3, 16  ;;  %v2224_v5 = vrot.slane %v2216_v4, %v4342_v53  ;;  %v2180_v7 = vcombine.high %v2156_v3, %v4049_v11  ;;  %v2231_v21 = vrot.slane %v2217_v14, %v4342_v53  ;;  %v2181_v23 = vcombine.high %v2163_v15, %v4049_v11 }
 0x5b8   : > { %v2240_v31 = vrot.slane %v2232_v29, %v4342_v53  ;;  %v2182_v32 = vcombine.high %v2172_v9, %v4049_v11  ;;  %v2247_v39 = vrot.slane %v2233_v38, %v4342_v53  ;;  %v3918_v35 = vpop.eup %3917  ;;  %v2183_v46 = vcombine.high %v2179_v45, %v4049_v11 }
 0x5b9   : > { %2268 = vxpose.xlu1.c.b16.start.end [1/1] (short) (narrow) %v2224_v5, 16  ;;  %v2248_v13 = vcombine.high %v2224_v5, %v4049_v11  ;;  %v2249_v28 = vcombine.high %v2231_v21, %v4049_v11  ;;  %v1947_v42 = vsel %vm1931_vm6, %v3918_v35, 0.0 }
 0x5ba   : > { %v2250_v36 = vcombine.high %v2240_v31, %v4049_v11  ;;  %v2251_v48 = vcombine.high %v2247_v39, %v4049_v11 }
 0x5bb   : > { %2284 = vxpose.xlu0.c.b16.start.end [1/1] (short) (narrow) %v2180_v7, 16 }
 0x5bd   : > { %2300 = vxpose.xlu1.c.b16.start.end [1/1] (short) (narrow) %v2248_v13, 16 }
 0x5bf   : > { %2316 = vxpose.xlu0.c.b16.start.end [1/1] (short) (narrow) %v2163_v15, 16 }
 0x5c1   : > { %2332 = vxpose.xlu1.c.b16.start.end [1/1] (short) (narrow) %v2231_v21, 16 }
 0x5c3   : > { %2348 = vxpose.xlu0.c.b16.start.end [1/1] (short) (narrow) %v2181_v23, 16 }
 0x5c5   : > { %2364 = vxpose.xlu1.c.b16.start.end [1/1] (short) (narrow) %v2249_v28, 16 }
 0x5c7   : > { %2380 = vxpose.xlu0.c.b16.start.end [1/1] (short) (narrow) %v2172_v9, 16 }
 0x5c9   : > { %2396 = vxpose.xlu1.c.b16.start.end [1/1] (short) (narrow) %v2240_v31, 16 }
 0x5cb   : > { %2412 = vxpose.xlu0.c.b16.start.end [1/1] (short) (narrow) %v2182_v32, 16 }
 0x5cd   : > { %2428 = vxpose.xlu1.c.b16.start.end [1/1] (short) (narrow) %v2250_v36, 16 }
 0x5d1   : > { %2460 = vxpose.xlu1.c.b16.start.end [1/1] (short) (narrow) %v2247_v39, 16 }
 0x5d8   : > { %1945 = vadd.xlane.f32.xlu0 %v1944_v17 }
 0x5de   : > { %1948 = vadd.xlane.f32.xlu1 %v1947_v42 }
 0x605   : > { %2444 = vxpose.xlu0.c.b16.start.end [1/1] (short) (narrow) %v2179_v45, 16 }
 0x609   : > { %2476 = vxpose.xlu0.c.b16.start.end [1/1] (short) (narrow) %v2183_v46, 16 }
 0x60b   : > { %2492 = vxpose.xlu1.c.b16.start.end [1/1] (short) (narrow) %v2251_v48, 16 }
 0x619   : > { %v2260_v49 = vpop.trf.xlu0 }
 0x61b   : > { %v2276_v50 = vpop.trf.xlu1 }
 0x61d   : > { %v2292_v37 = vpop.trf.xlu0 }
 0x61f   : > { %v2308_v51 = vpop.trf.xlu1 }
 0x621   : > { %v2324_v52 = vpop.trf.xlu0 }
 0x622   : > { %v2508_v1 = vcombine.low %v2260_v49, %v2324_v52 }
 0x623   : > { %v2340_v33 = vpop.trf.xlu1 }
 0x624   : > { %v2557_v0 = vcombine.low %v2276_v50, %v2340_v33  ;;  %v2515_v10 = vrot.slane %v2508_v1, %v4335_v47  ;;  %v3907_v33 = vld [vmem:[%s4746_s25 + $0x8] sm:$0xff]  }
 0x625   : > { %v2356_v54 = vpop.trf.xlu0  ;;  %3771 = vmatpush3.bf16.msra.mxu0 %v3907_v33 }
 0x626   : > { %v2516_v2 = vcombine.low %v2292_v37, %v2356_v54  ;;  %v2564_v6 = vrot.slane %v2557_v0, %v4335_v47  ;;  %3772 = vmatprep.subr.bf16.mxu0 %v4043_v27 }
 0x627   : > { %v2372_v55 = vpop.trf.xlu1 }
 0x628   : > { %v2565_v11 = vcombine.low %v2308_v51, %v2372_v55  ;;  %v2523_v12 = vrot.slane %v2516_v2, %v4335_v47 }
 0x629   : > { %v2388_v56 = vpop.trf.xlu0 }
 0x62a   : > { %v2572_v7 = vrot.slane %v2565_v11, %v4335_v47  ;;  %v2540_v24 = vcombine.low %v2515_v10, %v2523_v12 }
 0x62b   : > { %v2404_v57 = vpop.trf.xlu1 }
 0x62c   : > { %v2589_v21 = vcombine.low %v2564_v6, %v2572_v7  ;;  %v2547_v32 = vrot.slane %v2540_v24, %v4342_v53 }
 0x62d   : > { %v2420_v58 = vpop.trf.xlu0 }
 0x62e   : > { %v2596_v9 = vrot.slane %v2589_v21, %v4342_v53 }
 0x62f   : > { %v2436_v59 = vpop.trf.xlu1 }
 0x633   : > { %v2468_v61 = vpop.trf.xlu1 }
 0x634   : > { %v2573_v8 = vcombine.low %v2404_v57, %v2468_v61 }
 0x636   : > { %v2580_v22 = vrot.slane %v2573_v8, %v4335_v47 }
 0x661   : > { %v1946_v60 = vpop.xlane.xlu0 %1945 }
 0x662   : > { %3919 = vrcp.f32 %v1946_v60 }
 0x667   : > { %v2452_v62 = vpop.trf.xlu0  ;;  %v1949_v63 = vpop.xlane.xlu1 %1948 }
 0x668   : > { %3921 = vrcp.f32 %v1949_v63  ;;  %v2524_v3 = vcombine.low %v2388_v56, %v2452_v62 }
 0x66a   : > { %v2531_v13 = vrot.slane %v2524_v3, %v4335_v47  ;;  %v3908_v3 = vld [vmem:[%s4746_s25] sm:$0xff]  }
 0x66b   : > { %v2484_v4 = vpop.trf.xlu0  ;;  %3773 = vmatpush3.bf16.msra.mxu0 %v3908_v3 }
 0x66c   : > { %v2532_v5 = vcombine.low %v2420_v58, %v2484_v4  ;;  %3786 = vmatprep.subr.bf16.mxu0 %v4043_v27 }
 0x66d   : > { %v2500_v15 = vpop.trf.xlu1 }
 0x66e   : > { %v2539_v14 = vrot.slane %v2532_v5, %v4335_v47  ;;  %v2581_v18 = vcombine.low %v2436_v59, %v2500_v15 }
 0x66f   : > { %v3920_v16 = vpop.eup %3919 }
 0x670   : > { %v2548_v19 = vcombine.low %v2531_v13, %v2539_v14  ;;  %v1952_v20 = vmul.f32 %v3920_v16, %v3916_v41  ;;  %v2588_v23 = vrot.slane %v2581_v18, %v4335_v47 }
 0x672   : > { %v1954_v25 = vpack.c.bf16 %v1952_v20, %v1952_v20  ;;  %v2597_v26 = vcombine.low %v2580_v22, %v2588_v23  ;;  %v2555_v28 = vrot.slane %v2548_v19, %v4342_v53 }
 0x674   : > { %v2616_v29 = vsel %vm1931_vm6, %v1954_v25, 0  ;;  %v2604_v30 = vrot.slane %v2597_v26, %v4342_v53  ;;  %v2556_v38 = vcombine.low %v2547_v32, %v2555_v28  ;;  %v4530_v26 = vld [vmem:[%s4272_s13] sm:$0x3f] }
 0x675   : > { %3759 = vmatpush3.bf16.xpose.msra.mxu1 %v2616_v29  ;;  %v3922_v31 = vpop.eup %3921 }
 0x676   : > { %3764 = vmatprep.subr.bf16.mxu1 %v4043_v27  ;;  %v2605_v34 = vcombine.low %v2596_v9, %v2604_v30  ;;  %v1953_v36 = vmul.f32 %v3922_v31, %v3918_v35  ;;  %v2609_v43 = vshrl.u32 %v2556_v38, 16  ;;  %v3933_v30 = vld [vmem:[#allocation2] sm:$0xff] }
 0x678   : > { %v1955_v39 = vpack.c.bf16 %v1953_v36, %v1953_v36  ;;  %v2608_v41 = vpack.i.b16 %v2605_v34, %v2556_v38  ;;  %v2610_v42 = vshrl.u32 %v2605_v34, 16 }
 0x67a   : > { %v2663_v17 = vsel %vm1931_vm6, %v1955_v39, 0  ;;  %v2611_v45 = vpack.i.b16 %v2610_v42, %v2609_v43  ;;  %v3909_v43 = vld [vmem:[%s4267_s17 + $0x8] sm:$0xff]  }
 0x67c   : > { %3761 = vmatmul.mubr.msk.bf16.vlgmr.msra.gmra.mxu1 %vm1931_vm6, %v2608_v41 }
 0x67d   : > { %3765 = vmatpush3.bf16.xpose.msra.mxu1 %v2663_v17  ;;  %3766 = vmatprep.mubr.msk.bf16.mxu1 %vm4044_vm3, %v4043_v27 }
 0x67e   : > { %3778 = vmatprep.subr.bf16.mxu1 %v4043_v27 }
 0x684   : > { %3767 = vmatmul.mubr.msk.bf16.vlgmr.msra.gmra.mxu1 %vm1931_vm6, %v2611_v45  ;;  %v3910_v45 = vld [vmem:[%s4267_s17] sm:$0xff]  }
 0x685   : > { %3782 = vmatprep.mubr.msk.bf16.mxu1 %vm4044_vm3, %v4043_v27  ;;  %3779 = vmatpush3.bf16.msra.mxu1 %v3909_v43 }
 0x686   : > { %3780 = vmatprep.subr.bf16.mxu1 %v4043_v27 }
 0x689   : > { %3781 = vmatpush3.bf16.msra.mxu1 %v3910_v45 }
 0x73c   : > { %v2652_v35 = vpop.f32.mrf.mxu1 }
 0x73d   : > { %2706 = vxpose.xlu0.b32.start [1/2] (short) (narrow) %v2652_v35, 8 }
 0x73e   : > { %v3762_v46 = vpop.f32.mrf.mxu1 }
 0x740   : > { %v2655_v48 = vpop.f32.mrf.mxu1 }
 0x741   : > { %2707 = vxpose.xlu0.b32.end [2/2] (short) (narrow) %v2655_v48, 8 }
 0x742   : > { %v3763_v49 = vpop.f32.mrf.mxu1 }
 0x744   : > { %v2699_v50 = vpop.f32.mrf.mxu1 }
 0x745   : > { %2738 = vxpose.xlu1.b32.start [1/2] (short) (narrow) %v2699_v50, 8 }
 0x746   : > { %v3768_v37 = vpop.f32.mrf.mxu1 }
 0x748   : > { %v2702_v51 = vpop.f32.mrf.mxu1 }
 0x749   : > { %2739 = vxpose.xlu1.b32.end [2/2] (short) (narrow) %v2702_v51, 8 }
 0x74a   : > { %v3769_v52 = vpop.f32.mrf.mxu1 }
 0x7b9   : > { %v2722_v54 = vpop.trf.xlu0 }
 0x7ba   : > { %v2770_v55 = vcombine.high %v2722_v54, %v4043_v27  ;;  %v2777_v56 = vrot.slane %v2722_v54, %v4335_v47  ;;  %v2979_v54 = vsub.s32 1, %v4332_v44 }
 0x7bc   : > { %v2784_v58 = vrot.slane %v2770_v55, %v4335_v47  ;;  %v2980_v55 = vrot.slane %v4530_v26, %v2979_v54 }
 0x7c1   : > { %v2754_v57 = vpop.trf.xlu1 }
 0x7c2   : > { %v2785_v59 = vcombine.high %v2754_v57, %v4043_v27  ;;  %v2792_v60 = vrot.slane %v2754_v57, %v4335_v47 }
 0x7c4   : > { %v2799_v61 = vrot.slane %v2785_v59, %v4335_v47  ;;  %v2800_v62 = vcombine.low %v2777_v56, %v2792_v60  ;;  %v2801_v63 = vcombine.high %v2777_v56, %v2792_v60  ;;  %v2985_v56 = vsub.s32 2, %v4332_v44 }
 0x7c6   : > { %v2808_v0 = vrot.slane %v2800_v62, %v4342_v53  ;;  %v2815_v11 = vrot.slane %v2801_v63, %v4342_v53  ;;  %v2816_v1 = vcombine.low %v2784_v58, %v2799_v61  ;;  %v2817_v2 = vcombine.high %v2784_v58, %v2799_v61  ;;  %v3911_v63 = vld [vmem:[%s4286_s29 + $0x18] sm:$0xff]  }
 0x7c7   : > { %v2986_v58 = vrot.slane %v4530_v26, %v2985_v56 }
 0x7c8   : > { %v2824_v4 = vrot.slane %v2816_v1, %v4342_v53  ;;  %v2831_v5 = vrot.slane %v2817_v2, %v4342_v53  ;;  %v2836_v6 = vcombine.low %v2808_v0, %v2815_v11  ;;  %v3678_v7 = vcombine.high %v2808_v0, %v2815_v11  ;;  %v3912_v0 = vld [vmem:[%s4286_s29 + $0x10] sm:$0xff]   ;;  %v3913_v11 = vld [vmem:[%s4286_s29 + $0x8] sm:$0xff]   ;;  %v3914_v1 = vld [vmem:[%s4286_s29] sm:$0xff]  }
 0x7c9   : > { %v3683_v2 = vld [vmem:[%s4747_s12] ss:$0 sm:$0xff]  ;;  %s4753_s12 = sld [smem:[#allocation30_spill]] (!%p3692_p1) }
 0x7ca   : > { %v2843_v8 = vrot.slane %v2836_v6, %v4335_v47  ;;  %v2851_v10 = vrot.slane %v3678_v7, %v4335_v47  ;;  %v2852_v12 = vcombine.low %v2824_v4, %v2831_v5  ;;  %v3679_v13 = vcombine.high %v2824_v4, %v2831_v5 }
 0x7cc   : > { %v2859_v14 = vrot.slane %v2852_v12, %v4335_v47  ;;  %v2867_v15 = vrot.slane %v3679_v13, %v4335_v47  ;;  %v2868_v16 = vcombine.low %v2843_v8, %v2851_v10  ;;  %v2898_v47 = vsub.s32 0, %v4332_v44 }
 0x7ce   : > { %v2876_v18 = vcombine.low %v2859_v14, %v2867_v15  ;;  %v2875_v19 = vrot.slane %v2868_v16, %v4342_v53 }
 0x7d0   : > { %v2883_v20 = vrot.slane %v2876_v18, %v4342_v53  ;;  %v2899_v53 = vrot.slane %v4530_v26, %v2898_v47 }
 0x7d2   : > { %v2885_v21 = vcombine.high %v2875_v19, %v2883_v20  ;;  %v2884_v22 = vcombine.low %v2875_v19, %v2883_v20  ;;  %v3075_v20 = vsub.s32 3, %v4332_v44 }
 0x7d4   : > { %2887 = vrot.lane.b32.xlu0 %v2885_v21, %s4051_s5  ;;  %v3076_v21 = vrot.slane %v4530_v26, %v3075_v20 }
 0x846   : > { %v2888_v23 = vpop.permute.xlu0 %2887 }
 0x847   : > { %v2890_v24 = vsel %vm1834_vm5, %v2884_v22, %v2888_v23 }
 0x848   : > { %v2891_v25 = vpack.c.bf16 %v2890_v24, %v2890_v24 }
 0x84a   : > { %3775 = vmatmul.mubr.msk.bf16.vlgmr.msra.gmra.mxu0 %vm839_vm4, %v2891_v25 }
 0x84b   : > { %3794 = vmatprep.mubr.msk.bf16.mxu0 %vm4044_vm3, %v4043_v27  ;;  %3787 = vmatpush3.bf16.msra.mxu0 %v3911_v63 }
 0x84c   : > { %3788 = vmatprep.subr.bf16.mxu0 %v4043_v27 }
 0x84f   : > { %3789 = vmatpush3.bf16.msra.mxu0 %v3912_v0 }
 0x850   : > { %3790 = vmatprep.subr.bf16.mxu0 %v4043_v27 }
 0x853   : > { %3791 = vmatpush3.bf16.msra.mxu0 %v3913_v11 }
 0x854   : > { %3792 = vmatprep.subr.bf16.mxu0 %v4043_v27 }
 0x857   : > { %3793 = vmatpush3.bf16.msra.mxu0 %v3914_v1 }
 0x90a   : > { %v2949_v28 = vpop.f32.mrf.mxu0 }
 0x90b   : > { %v2950_v29 = vadd.f32 %v2949_v28, %v2899_v53 }
 0x90c   : > { %v3776_v9 = vpop.f32.mrf.mxu0 }
 0x90d   : > { %v2955_v31 = vadd.f32 %v3933_v30, %v2950_v29 }
 0x90e   : > { %v2952_v32 = vpop.f32.mrf.mxu0 }
 0x90f   : > { %v2956_v34 = vsel %vm839_vm4, %v2955_v31, 0.0 }
 0x910   : > { %v3777_v36 = vpop.f32.mrf.mxu0  ;;  %2957 = vadd.xlane.f32.xlu1 %v2956_v34 }
 0x999   : > { %v2958_v38 = vpop.xlane.xlu1 %2957 }
 0x99a   : > { %v2960_v39 = vmul.f32 0.03125, %v2958_v38 }
 0x99c   : > { %v2961_v41 = vsub.f32 %v2955_v31, %v2960_v39 }
 0x99e   : > { %v2962_v17 = vmul.f32 %v2961_v41, %v2961_v41  ;;  %v2981_v57 = vmul.f32 %v2980_v55, %v2961_v41 }
 0x9a0   : > { %v2963_v42 = vsel %vm839_vm4, %v2962_v17, 0.0 }
 0x9a1   : > { %2964 = vadd.xlane.f32.xlu0 %v2963_v42 }
 0xa2a   : > { %v2965_v35 = vpop.xlane.xlu0 %2964 }
 0xa2b   : > { %v2966_v46 = vmul.f32 0.03125, %v2965_v35 }
 0xa2d   : > { %v2967_v48 = vmul.f32 1.032258, %v2966_v46  ;;  %v3168_v46 = vsub.s32 4, %v4332_v44 }
 0xa2f   : > { %3923 = vrsqrt.f32 %v2967_v48  ;;  %vm2970_vm7 = vcmp.eq.f32.partialorder %v2967_v48, inf  ;;  %v2973_v37 = vand.u32 2147483648, %v2967_v48  ;;  %vm2972_vm8 = vcmp.eq.f32.partialorder %v2967_v48, 0.0 }
 0xa3c   : > { %v3924_v49 = vpop.eup %3923 }
 0xa3d   : > { %v2969_v50 = vmul.f32 %v3924_v49, %v2967_v48  ;;  %v3169_v49 = vrot.slane %v4530_v26, %v3168_v46 }
 0xa3f   : > { %v2971_v51 = vsel %vm2970_vm7, %v2967_v48, %v2969_v50  ;;  %v3174_v48 = vsub.s32 5, %v4332_v44 }
 0xa40   : > { %v2974_v52 = vsel %vm2972_vm8, %v2973_v37, %v2971_v51 }
 0xa41   : > { %v2975_v33 = vadd.f32 1e-06, %v2974_v52  ;;  %v3175_v50 = vrot.slane %v4530_v26, %v3174_v48 }
 0xa43   : > { %3925 = vrcp.f32 %v2975_v33 }
 0xa50   : > { %v3926_v59 = vpop.eup %3925 }
 0xa51   : > { %v2982_v60 = vmul.f32 %v3926_v59, %v2981_v57 }
 0xa53   : > { %v2987_v61 = vadd.f32 %v2986_v58, %v2982_v60 }
 0xa55   : > { %v2988_v62 = vpack.c.bf16 %v2987_v61, %v2987_v61 }
 0xa57   : > { %3783 = vmatmul.mubr.msk.bf16.vlgmr.msra.gmra.mxu1 %vm839_vm4, %v2988_v62 }
 0xb17   : > { %v3049_v3 = vpop.f32.mrf.mxu1 }
 0xb18   : > { %v3050_v4 = vadd.f32 %v3683_v2, %v3049_v3 }
 0xb19   : > { %v3784_v5 = vpop.f32.mrf.mxu1 }
 0xb1a   : > { %v3056_v6 = vmul.f32 0.044715, %v3050_v4  ;;  %v3055_v16 = vmul.f32 0.5, %v3050_v4 }
 0xb1b   : > { %v3052_v7 = vpop.f32.mrf.mxu1 }
 0xb1c   : > { %v3057_v8 = vmul.f32 %v3056_v6, %v3050_v4 }
 0xb1d   : > { %v3785_v10 = vpop.f32.mrf.mxu1 }
 0xb1e   : > { %v3058_v12 = vmul.f32 %v3057_v8, %v3050_v4 }
 0xb20   : > { %v3059_v13 = vadd.f32 %v3058_v12, %v3050_v4 }
 0xb22   : > { %v3060_v14 = vmul.f32 0.7978846, %v3059_v13 }
 0xb24   : > { %3927 = vtanh.f32 %v3060_v14 }
 0xb31   : > { %v3928_v15 = vpop.eup %3927 }
 0xb32   : > { %v3062_v27 = vadd.f32 1.0, %v3928_v15 }
 0xb34   : > { %v3063_v18 = vmul.f32 %v3062_v27, %v3055_v16 }
 0xb36   : > { %v3064_v19 = vpack.c.bf16 %v3063_v18, %v3063_v18 }
 0xb38   : > { %3795 = vmatmul.mubr.msk.bf16.vlgmr.msra.gmra.mxu0 %vm3101_vm9, %v3064_v19 }
 0xbf8   : > { %v3139_v22 = vpop.f32.mrf.mxu0 }
 0xbf9   : > { %v3140_v23 = vadd.f32 %v3139_v22, %v3076_v21 }
 0xbfa   : > { %v3796_v24 = vpop.f32.mrf.mxu0 }
 0xbfb   : > { %v3145_v25 = vadd.f32 %v3140_v23, %v2987_v61 }
 0xbfc   : > { %v3142_v53 = vpop.f32.mrf.mxu0 }
 0xbfd   : > { %v3146_v28 = vsel %vm839_vm4, %v3145_v25, 0.0 }
 0xbfe   : > { %3147 = vadd.xlane.f32.xlu1 %v3146_v28  ;;  %v3797_v29 = vpop.f32.mrf.mxu0 }
 0xc87   : > { %v3148_v9 = vpop.xlane.xlu1 %3147 }
 0xc88   : > { %v3149_v30 = vmul.f32 0.03125, %v3148_v9 }
 0xc8a   : > { %v3150_v31 = vsub.f32 %v3145_v25, %v3149_v30 }
 0xc8c   : > { %v3151_v32 = vmul.f32 %v3150_v31, %v3150_v31  ;;  %v3170_v37 = vmul.f32 %v3169_v49, %v3150_v31 }
 0xc8e   : > { %v3152_v34 = vsel %vm839_vm4, %v3151_v32, 0.0 }
 0xc8f   : > { %3153 = vadd.xlane.f32.xlu1 %v3152_v34 }
 0xd18   : > { %v3154_v36 = vpop.xlane.xlu1 %3153 }
 0xd19   : > { %v3155_v38 = vmul.f32 0.03125, %v3154_v36 }
 0xd1b   : > { %v3156_v39 = vmul.f32 1.032258, %v3155_v38 }
 0xd1d   : > { %3929 = vrsqrt.f32 %v3156_v39  ;;  %vm3159_vm10 = vcmp.eq.f32.partialorder %v3156_v39, inf  ;;  %v3162_v42 = vand.u32 2147483648, %v3156_v39  ;;  %vm3161_vm11 = vcmp.eq.f32.partialorder %v3156_v39, 0.0 }
 0xd2a   : > { %v3930_v41 = vpop.eup %3929 }
 0xd2b   : > { %v3158_v17 = vmul.f32 %v3930_v41, %v3156_v39 }
 0xd2d   : > { %v3160_v43 = vsel %vm3159_vm10, %v3156_v39, %v3158_v17 }
 0xd2e   : > { %v3163_v45 = vsel %vm3161_vm11, %v3162_v42, %v3160_v43 }
 0xd2f   : > { %v3164_v35 = vadd.f32 1e-06, %v3163_v45 }
 0xd31   : > { %3931 = vrcp.f32 %v3164_v35 }
 0xd3e   : > { %v3932_v51 = vpop.eup %3931 }
 0xd3f   : > { %v3171_v52 = vmul.f32 %v3932_v51, %v3170_v37  ;;  %3181 = sbr.rel (%p3692_p1) target bundleno = 4817 (0x12d1), region = 96 }
 0xd41   : > { %v3176_v33 = vadd.f32 %v3175_v50, %v3171_v52 }
 0xd43   : > { %3177 = vst.msk [vmem:[#allocation2] sm:$0xff] %vm839_vm4, %v3176_v33 }
 0xd44   : > { %v3935_v55 = vld [vmem:[%s4749_s3 + $0x8] sm:$0xff]   ;;  %v4052_v57 = vmov 0.0   ;;  %v3936_v26 = vld [vmem:[%s4749_s3] sm:$0xff]   ;;  %vm4053_vm12 = vmmov 0   ;;  %v4054_v45 = vmov 0   ;;  %v3368_v37 = vand.u32 127, %v891_v40 }
 0xd45   : > { %3798 = vmatprep.subr.bf16.mxu0 %v4052_v57  ;;  %3806 = vmatprep.subr.bf16.mxu1 %v4052_v57  ;;  %v3182_v60 = vld [vmem:[%s4750_s2] sm:$0x7]  ;;  %v3937_v18 = vld [vmem:[%s4751_s1 + $0x8] sm:$0xff]   ;;  %vm3383_vm1 = vcmask 7168   ;;  %vm3406_vm2 = vcmp.eq.s32.totalorder %v4332_v44, 0 }
 0xd46   : > { %3799 = vmatpush3.bf16.msra.mxu0 %v3935_v55  ;;  %3802 = vmatprep.mubr.msk.bf16.mxu0 %vm4053_vm12, %v4052_v57  ;;  %v3192_v61 = vrot.slane %v3182_v60, %v2898_v47  ;;  %v3938_v19 = vld [vmem:[%s4752_s4] sm:$0xff]   ;;  %v3280_v9 = vrot.slane %v3182_v60, %v2979_v54  ;;  %v3286_v31 = vrot.slane %v3182_v60, %v2985_v56  ;;  %vm3407_vm3 = vcmp.eq.s32.totalorder %v3368_v37, 0 }
 0xd47   : > { %3800 = vmatprep.subr.bf16.mxu0 %v4052_v57  ;;  %3810 = vmatprep.mubr.msk.bf16.mxu1 %vm4053_vm12, %v4052_v57  ;;  %v3696_v39 = vld [vmem:[%s4753_s12] ss:$0 sm:$0xff]  ;;  %vm3408_vm5 = vmand %vm3406_vm2, %vm3407_vm3 }
 0xd48   : > { %3807 = vmatpush3.bf16.msra.mxu1 %v3937_v18  ;;  %v3366_v56 = vld [vmem:[%s762_s22] sm:$0xff]  ;;  %3934 = vset.pattern.permute.xlu0 %v4054_v45 }
 0xd49   : > { %3808 = vmatprep.subr.bf16.mxu1 %v4052_v57  ;;  %vm3379_vm0 = vcmp.gt.s32.totalorder %v3366_v56, 0 }
 0xd4a   : > { %v3183_v58 = vld [vmem:[#allocation2] sm:$0xff]  ;;  %3801 = vmatpush3.bf16.msra.mxu0 %v3936_v26  ;;  %v3701_v60 = vsel %vm3379_vm0, 1.0, %v4052_v57 }
 0xd4b   : > { %v3184_v59 = vpack.c.bf16 %v3183_v58, %v3183_v58  ;;  %v3394_v40 = vsel %vm3383_vm1, %v3701_v60, 0.0 }
 0xd4c   : > { %3809 = vmatpush3.bf16.msra.mxu1 %v3938_v19 }
 0xd4d   : > { %3803 = vmatmul.mubr.msk.bf16.vlgmr.msra.gmra.mxu0 %vm839_vm4, %v3184_v59 }
 0xe0d   : > { %v3242_v62 = vpop.f32.mrf.mxu0 }
 0xe0e   : > { %v3243_v63 = vadd.f32 %v3242_v62, %v3192_v61 }
 0xe0f   : > { %v3804_v0 = vpop.f32.mrf.mxu0 }
 0xe10   : > { %v3249_v11 = vmul.f32 0.044715, %v3243_v63  ;;  %v3248_v8 = vmul.f32 0.5, %v3243_v63 }
 0xe11   : > { %v3245_v1 = vpop.f32.mrf.mxu0 }
 0xe12   : > { %v3250_v2 = vmul.f32 %v3249_v11, %v3243_v63 }
 0xe13   : > { %v3805_v3 = vpop.f32.mrf.mxu0 }
 0xe14   : > { %v3251_v4 = vmul.f32 %v3250_v2, %v3243_v63 }
 0xe16   : > { %v3252_v5 = vadd.f32 %v3251_v4, %v3243_v63 }
 0xe18   : > { %v3253_v6 = vmul.f32 0.7978846, %v3252_v5 }
 0xe1a   : > { %3939 = vtanh.f32 %v3253_v6 }
 0xe27   : > { %v3940_v7 = vpop.eup %3939 }
 0xe28   : > { %v3255_v10 = vadd.f32 1.0, %v3940_v7 }
 0xe2a   : > { %v3256_v12 = vmul.f32 %v3255_v10, %v3248_v8 }
 0xe2c   : > { %v3257_v13 = vsel %vm839_vm4, %v3256_v12, 0.0 }
 0xe2d   : > { %3258 = vadd.xlane.f32.xlu0 %v3257_v13 }
 0xeb6   : > { %v3259_v14 = vpop.xlane.xlu0 %3258 }
 0xeb7   : > { %v3260_v47 = vmul.f32 0.03125, %v3259_v14 }
 0xeb9   : > { %v3261_v15 = vsub.f32 %v3256_v12, %v3260_v47 }
 0xebb   : > { %v3262_v16 = vmul.f32 %v3261_v15, %v3261_v15  ;;  %v3281_v30 = vmul.f32 %v3280_v9, %v3261_v15 }
 0xebd   : > { %v3263_v27 = vsel %vm839_vm4, %v3262_v16, 0.0 }
 0xebe   : > { %3264 = vadd.xlane.f32.xlu0 %v3263_v27 }
 0xed4   : > { %3370 = vperm.xlu0 %3934, %v3366_v56  }
 0xf47   : > { %v3265_v20 = vpop.xlane.xlu0 %3264 }
 0xf48   : > { %v3266_v21 = vmul.f32 0.03125, %v3265_v20 }
 0xf4a   : > { %v3267_v22 = vmul.f32 1.032258, %v3266_v21 }
 0xf4c   : > { %3941 = vrsqrt.f32 %v3267_v22  ;;  %vm3270_vm13 = vcmp.eq.f32.partialorder %v3267_v22, inf  ;;  %v3273_v25 = vand.u32 2147483648, %v3267_v22  ;;  %vm3272_vm14 = vcmp.eq.f32.partialorder %v3267_v22, 0.0 }
 0xf4f   : > { %v3371_v51 = vpop.permute.xlu0 %3370 }
 0xf50   : > { %vm3372_vm15 = vcmp.eq.s32.totalorder %v3368_v37, %v3371_v51 }
 0xf51   : > { %v3700_v55 = vsel %vm3372_vm15, 1.0, %v4052_v57 }
 0xf59   : > { %v3942_v23 = vpop.eup %3941 }
 0xf5a   : > { %v3269_v24 = vmul.f32 %v3942_v23, %v3267_v22 }
 0xf5c   : > { %v3271_v53 = vsel %vm3270_vm13, %v3267_v22, %v3269_v24 }
 0xf5d   : > { %v3274_v28 = vsel %vm3272_vm14, %v3273_v25, %v3271_v53 }
 0xf5e   : > { %v3275_v29 = vadd.f32 1e-06, %v3274_v28 }
 0xf60   : > { %3943 = vrcp.f32 %v3275_v29 }
 0xf6d   : > { %v3944_v32 = vpop.eup %3943 }
 0xf6e   : > { %v3282_v34 = vmul.f32 %v3944_v32, %v3281_v30 }
 0xf70   : > { %v3287_v36 = vadd.f32 %v3286_v31, %v3282_v34 }
 0xf72   : > { %v3288_v38 = vpack.c.bf16 %v3287_v36, %v3287_v36 }
 0xf74   : > { %3811 = vmatmul.mubr.msk.bf16.vlgmr.msra.gmra.mxu1 %vm839_vm4, %v3288_v38  ;;  %vm3411_vm4 = vcmp.eq.s32.totalorder %v3368_v37, 1 }
 0xf75   : > { %vm3412_vm6 = vmand %vm3406_vm2, %vm3411_vm4 }
0x1034   : > { %v3349_v41 = vpop.f32.mrf.mxu1 }
0x1035   : > { %v3350_v17 = vadd.f32 %v3696_v39, %v3349_v41 }
0x1036   : > { %v3812_v42 = vpop.f32.mrf.mxu1 }
0x1037   : > { %3355 = vmax.xlane.f32.xlu1 %v3350_v17 }
0x1038   : > { %v3352_v43 = vpop.f32.mrf.mxu1 }
0x103a   : > { %v3813_v54 = vpop.f32.mrf.mxu1 }
0x10c0   : > { %v3356_v35 = vpop.xlane.xlu1 %3355 }
0x10c1   : > { %v3357_v46 = vsub.f32 %v3350_v17, %v3356_v35 }
0x10c3   : > { %v3358_v48 = vmul.f32 1.442695, %v3357_v46 }
0x10c5   : > { %3945 = vpow2.f32 %v3358_v48 }
0x10d2   : > { %v3946_v49 = vpop.eup %3945 }
0x10d3   : > { %3360 = vadd.xlane.f32.xlu1 %v3946_v49 }
0x115c   : > { %v3361_v50 = vpop.xlane.xlu1 %3360 }
0x115d   : > { %3947 = vlog2.f32 %v3361_v50 }
0x116a   : > { %v3948_v52 = vpop.eup %3947 }
0x116b   : > { %v3363_v33 = vmul.f32 0.6931472, %v3948_v52 }
0x116d   : > { %v3364_v26 = vsub.f32 %v3357_v46, %v3363_v33 }
0x116f   : > { %3365 = vst [vmem:[%s711_s27] sm:$0xff] %v3364_v26  ;;  %v3375_v58 = vmul.f32 %v3700_v55, %v3364_v26 }
0x1171   : > { %3376 = vadd.xlane.f32.xlu1 %v3375_v58 }
0x11fa   : > { %v3377_v59 = vpop.xlane.xlu1 %3376 }
0x11fb   : > { %v3378_v61 = vsub.f32 0.0, %v3377_v59 }
0x11fd   : > { %v3382_v62 = vmul.f32 %v3701_v60, %v3378_v61 }
0x11ff   : > { %v3384_v63 = vsel %vm3383_vm1, %v3382_v62, 0.0 }
0x1200   : > { %3385 = vadd.xlane.f32.xlu1 %v3384_v63 }
0x1204   : > { %3395 = vadd.xlane.f32.xlu1 %v3394_v40 }
0x1289   : > { %v3386_v0 = vpop.xlane.xlu1 %3385 }
0x128a   : > { %v3387_v11 = vrot.slane %v3386_v0, 4 }
0x128c   : > { %v3388_v1 = vadd.f32 %v3387_v11, %v3386_v0 }
0x128d   : > { %v3396_v2 = vpop.xlane.xlu1 %3395 }
0x128e   : > { %v3389_v3 = vrot.slane %v3388_v1, 2  ;;  %v3397_v4 = vrot.slane %v3396_v2, 4 }
0x1290   : > { %v3398_v5 = vadd.f32 %v3397_v4, %v3396_v2  ;;  %v3390_v6 = vadd.f32 %v3389_v3, %v3388_v1 }
0x1292   : > { %v3399_v7 = vrot.slane %v3398_v5, 2  ;;  %v3391_v8 = vrot.slane %v3390_v6, 1 }
0x1294   : > { %v3400_v10 = vadd.f32 %v3399_v7, %v3398_v5  ;;  %v3392_v12 = vadd.f32 %v3391_v8, %v3390_v6 }
0x1296   : > { %3814 = vpush %v3392_v12  ;;  %v3401_v57 = vrot.slane %v3400_v10, 1 }
0x1298   : > { %v3402_v13 = vadd.f32 %v3401_v57, %v3400_v10 }
0x129a   : > { %3816 = vpush %v3402_v13 }
0x12c7   : > { %s3815_s22 = spop %3814 }
0x12c8   : > { %v3409_v14 = vstv %s3815_s22 }
0x12c9   : > { %v3410_v15 = vsel %vm3408_vm5, %v3409_v14, 0.0 }
0x12cb   : > { %s3817_s0 = spop %3816 }
0x12cc   : > { %v3413_v47 = vstv %s3817_s0 }
0x12cd   : > { %v3414_v16 = vsel %vm3412_vm6, %v3413_v47, 0.0 }
0x12ce   : > { %v3415_v27 = vadd.f32 %v3414_v16, %v3410_v15 }
0x12d0   : > { %3416 = vst [vmem:[%s766_s28] sm:$0xff] %v3415_v27 }
0x12d1 PF: > { %s4754_s30 = sld [smem:[#allocation10_spill]]  ;;  %s3435_s17 = sshll.u32 %s711_s27, 4  ;;  %s3436_s17 = int_to_ptr.vmem [resolvable:$true] %s3435_s17 }
0x12d2   : > { %s4755_s15 = sld [smem:[#allocation7_spill]]  ;;  %s3949_s26 = scalar_lea.vmem %s3436_s17, 128 }
0x12d3   : > { %s4757_s25 = sld [smem:[#allocation31_spill]]  ;;  %p3950_p2 = scmp.ne.s32.totalorder %s3436_s17, %s3949_s26 }
0x12d4   : > { %s4055_s21 = smov [#allocation3]  }
0x12d5   : > { %p3951_p4 = pnand %p3950_p2, %p4200_p3  ;;  %s3953_s28 = sshll.u32 %s4055_s21, 4  ;;  %s3954_s28 = int_to_ptr.vmem [resolvable:$false] %s3953_s28 }
0x12d6   : > { %s3955_s29 = scalar_lea.vmem %s3954_s28, 256  ;;  %p3956_p6 = scmp.lt.s32.totalorder %s3436_s17, %s3954_s28 }
0x12d7   : > { %s3703_s24 = sshll.u32 %s4754_s30, 7  ;;  %p3952_p5 = pneg %p3951_p4 }
0x12d8   : > { %s4758_s13 = sand.u32 1, %s4755_s15   ;;  %p3957_p7 = scmp.lt.s32.totalorder %s3955_s29, %s3949_s26 }
0x12d9   : > { %s3433_s5 = scalar_lea.hbm %s4757_s25, %s3703_s24  ;;  %s3418_s12 = scalar_lea.sflag [#allocation4], %s4758_s13 }
0x12da   : > { %p3958_p8 = por %p3957_p7, %p3956_p6 }
0x12dc   : > { %p3959_p10 = pnand %p3958_p8, %p3952_p5 }
0x12de   : > { %3962 = shalt.err (!%p3959_p10)
}
0x12df   : > { %s3963_s22 = scalar_lea.hbm %s3433_s5, 128  ;;  %s3967_s0 = scalar_lea.hbm %s4757_s25, 256 }
0x12e0   : > { %p3964_p11 = scmp.ne.s32.totalorder %s3433_s5, %s3963_s22  ;;  %p3968_p0 = scmp.lt.s32.totalorder %s3433_s5, %s4757_s25 }
0x12e1   : > { %p3969_p1 = scmp.lt.s32.totalorder %s3967_s0, %s3963_s22 }
0x12e2   : > { %p3965_p12 = pnand %p3964_p11, %p4200_p3 }
0x12e3   : > { %p3970_p2 = por %p3969_p1, %p3968_p0 }
0x12e4   : > { %p3966_p13 = pneg %p3965_p12 }
0x12e6   : > { %p3971_p4 = pnand %p3970_p2, %p3966_p13 }
0x12e8   : > { %3974 = shalt.err (!%p3971_p4)
}
0x12e9   : > { %3818 = dma.vmem_to_hbm [thread:$0]  (%p4200_p3), %s3436_s17, 128, %s3433_s5, %s3418_s12  }
0x12ea PF: > { %s4759_s30 = sld [smem:[#allocation13_spill]] }
0x12eb   : > { %s4760_s15 = sld [smem:[#allocation6_spill]] }
0x12f0   : > { %p3824_p5 = scmp.ge.s32.totalorder %s4759_s30, 2 }
0x12f1   : > { %s3450_s14 = sand.u32 1, %s4760_s15  }
0x12f2   : > { %p3821_p6 = pnand %p3824_p5, %p4210_p9  ;;  %s3451_s1 = scalar_lea.sflag [#allocation4], %s3450_s14 }
0x12f4   : > { %p3822_p7 = pneg %p3821_p6 }
0x12f6   : > { %4008 = dma.done.wait (%p3822_p7), %s3451_s1, 128  }
0x12f7   : > { %4010 = vsyncadd (%p3822_p7), %s3451_s1, 4294967168  ;;  %s32_s20 = sadd.s32 1, %s4759_s30   ;;  %s4762_s27 = sld [smem:[#allocation7_spill]] }
0x12f8   : > { %p29_p8 = scmp.ge.s32.totalorder %s32_s20, 6   ;;  %s4763_s28 = sld [smem:[#allocation8_spill]] }
0x12f9   : > { %s4764_s29 = sld [smem:[#allocation18_spill]] }
0x12fa   : > { %s4765_s30 = sld [smem:[#allocation11_spill]]  ;;  %31 = sbr.rel (!%p29_p8) target bundleno = 18 (0x12), region = 173 }
0x12fb   : > { %s4766_s0 = sld [smem:[#allocation12_spill]] }
0x12fc   : > { %s4767_s19 = sld [smem:[#allocation14_spill]] }
0x12fd   : > { %s4768_s1 = sld [smem:[#allocation16_spill]] }
0x12ff   :  { %3463 = vsyncpa [#allocation4], 1 }
0x1300   :  { %3465 = vsyncpa [#allocation4 + $0x1], 1 }

</bundles_post_ra>
